<compile_context>
chip_gen: v6e
topology: v6e:2x2x1
jax: 0.10.0
libtpu: 0.0.40
codegen_flags: <defaults>
</compile_context>

<pallas_src>
import functools

import jax
import jax.numpy as jnp
from jax.experimental import pallas as pl
from jax.experimental.pallas import tpu as pltpu


def _round_up(n, m):
    return ((n + m - 1) // m) * m


def seq2seq_kernel(tf_ref,      # (S,) int32 teacher-force flags, SMEM
                   x_ref,       # (T*B, P) time-major flattened encoder input, VMEM
                   tgt_ref,     # (B, S)   teacher-forcing targets, VMEM
                   param_ref,   # (P+4H+8, 4H) packed parameter slab, VMEM
                   pred_ref):   # (B, S*P) output, VMEM
    TB, P = x_ref.shape
    B, S = tgt_ref.shape
    G = param_ref.shape[1]
    H = G // 4
    T = TB // B

    # ---- static row offsets into the parameter slab (must match prepare_params) ----
    WIH_E = 0
    WHH_E = WIH_E + P
    VEC = WHH_E + H          # 8-row block: +0 b_e, +1 wih_row, +2 b_d, +3 b_ar, +4 bfc
    WTF1 = VEC + 8
    WTF0 = WTF1 + H
    WFC = WTF0 + H

    # ---- hoisted weight / bias loads (static ref slices, read once, live in vregs) ----
    wih_e = param_ref[WIH_E:WIH_E + P, :]                      # (P, 4H)
    whh_e = param_ref[WHH_E:WHH_E + H, :]                      # (H, 4H)
    b_e = param_ref[VEC + 0:VEC + 1, :]                        # (1, 4H)
    wih_row = param_ref[VEC + 1:VEC + 2, :]                    # (1, 4H)  = Wih_d[:, 0]^T
    b_d = param_ref[VEC + 2:VEC + 3, :]                        # (1, 4H)
    b_ar = param_ref[VEC + 3:VEC + 4, :]                       # (1, 4H)  autoregressive bias
    bfc = param_ref[VEC + 4:VEC + 5, :P]                       # (1, P)
    w_tf1 = param_ref[WTF1:WTF1 + H, :]                        # (H, 4H)  = Whh_d^T
    w_tf0 = param_ref[WTF0:WTF0 + H, :]                        # (H, 4H)  = Whh_d^T + wfc_col@wih_row
    wfc = param_ref[WFC:WFC + H, :P]                           # (H, P)

    b_d_b = jnp.broadcast_to(b_d, (B, G))                      # broadcast once, not per step
    b_ar_b = jnp.broadcast_to(b_ar, (B, G))

    # ---- encoder input projection hoisted out of the serial loop: ONE matmul for all T steps ----
    gates_x = (jnp.dot(x_ref[...], wih_e, preferred_element_type=jnp.float32)
               + b_e)                                          # (T*B, 4H); rows [t*B:(t+1)*B] = step t

    def lstm_gates(gates, c_prev):
        # One sigmoid over the full 4H-lane vreg, tanh only on the g slice.
        sg = jax.nn.sigmoid(gates)
        i = sg[:, 0 * H:1 * H]
        f = sg[:, 1 * H:2 * H]
        o = sg[:, 3 * H:4 * H]
        g = jnp.tanh(gates[:, 2 * H:3 * H])
        c_new = f * c_prev + i * g
        h_new = o * jnp.tanh(c_new)
        return h_new, c_new

    h = jnp.zeros((B, H), jnp.float32)
    c = jnp.zeros((B, H), jnp.float32)

    # ---- encoder: T unrolled steps; only the recurrent matmul is on the dependency chain ----
    for t in range(T):
        gates = gates_x[t * B:(t + 1) * B, :] + jnp.dot(
            h, whh_e, preferred_element_type=jnp.float32)
        h, c = lstm_gates(gates, c)

    # ---- decoder: S unrolled steps; the chain per step is ONE K=H matmul + nonlinearities ----
    tgt = tgt_ref[...]                                         # (B, S)
    x_last = x_ref[(T - 1) * B:T * B, :]                       # x[:, -1, :] (padded) -> (B, P)
    # step-0 input is x[:, -1, 0]: fold it into the step-0 bias
    bias = x_last[:, 0:1] * wih_row + b_d_b                    # (B, 4H)
    W = w_tf1

    hs = []
    for s in range(S):
        gates = jnp.dot(h, W, preferred_element_type=jnp.float32) + bias
        h, c = lstm_gates(gates, c)
        hs.append(h)
        if s + 1 < S:
            # Select next step's folded weight/bias from the teacher-forcing flag.  These only
            # depend on flags/targets/constants, so they sit OFF the serial dependency chain.
            tf = tf_ref[s] > 0
            bias = jnp.where(tf, tgt[:, s:s + 1] * wih_row + b_d_b, b_ar_b)
            W = jnp.where(tf, w_tf1, w_tf0)

    # ---- Linear head, batched: ONE (S*B, H) @ (H, P) matmul after the loop, off the chain ----
    h_all = jnp.concatenate(hs, axis=0)                        # (S*B, H); rows [s*B:(s+1)*B] = step s
    out_all = jnp.dot(h_all, wfc, preferred_element_type=jnp.float32) + bfc   # (S*B, P)

    # single store of all decoder outputs, step s in lanes [s*P, (s+1)*P)
    pred_ref[...] = jnp.concatenate(
        [out_all[s * B:(s + 1) * B, :] for s in range(S)], axis=-1)           # (B, S*P)


def make_params(key, I, H, O):
    """Deterministic init mirroring nn.LSTM / nn.Linear shapes (uniform(-1/sqrt(H), 1/sqrt(H)))."""
    ks = jax.random.split(key, 10)
    s = 1.0 / float(H) ** 0.5

    def u(k, shape):
        return jax.random.uniform(k, shape, jnp.float32, -s, s)

    return dict(
        wih_e=u(ks[0], (4 * H, I)), whh_e=u(ks[1], (4 * H, H)),
        bih_e=u(ks[2], (4 * H,)),   bhh_e=u(ks[3], (4 * H,)),
        wih_d=u(ks[4], (4 * H, O)), whh_d=u(ks[5], (4 * H, H)),
        bih_d=u(ks[6], (4 * H,)),   bhh_d=u(ks[7], (4 * H,)),
        wfc=u(ks[8], (O, H)),       bfc=u(ks[9], (O,)),
    )


def prepare_params(params, I, O):
    """One-time (outside jit) weight prep: transpose, pad, fold feedback, pack into ONE slab."""
    H = params["whh_e"].shape[1]
    G = 4 * H
    P = _round_up(max(I, O), 8)           # padded feature dim (inert zero padding)

    def pad_rows(w, n):                   # (k, G) -> (n, G) zero-padded rows
        return jnp.zeros((n, w.shape[1]), jnp.float32).at[:w.shape[0], :].set(w)

    # encoder
    wih_e = pad_rows(params["wih_e"].T, P)                     # (P, G)
    whh_e = params["whh_e"].T                                  # (H, G)
    b_e = (params["bih_e"] + params["bhh_e"])[None, :]         # (1, G)

    # decoder with teacher-forcing / FC feedback folded into the recurrent weight (I = O = 1)
    whh_dT = params["whh_d"].T                                 # (H, G)  -> W_tf1
    wih_row = params["wih_d"][:, 0][None, :]                   # (1, G)  Wih_d column 0 as a row
    wfc_col = params["wfc"][0, :][:, None]                     # (H, 1)
    w_tf0 = whh_dT + wfc_col @ wih_row                         # (H, G)  autoregressive weight
    b_d = (params["bih_d"] + params["bhh_d"])[None, :]         # (1, G)
    b_ar = params["bfc"][0] * wih_row + b_d                    # (1, G)  autoregressive bias

    # Linear head, lane-padded to the slab width (only first O lanes nonzero)
    wfc_pad = jnp.zeros((H, G), jnp.float32).at[:, :O].set(params["wfc"].T)
    bfc_pad = jnp.zeros((1, G), jnp.float32).at[:, :O].set(params["bfc"][None, :])

    # vector block (8 rows, 8-sublane aligned): b_e, wih_row, b_d, b_ar, bfc
    vec_block = (jnp.zeros((8, G), jnp.float32)
                 .at[0].set(b_e[0])
                 .at[1].set(wih_row[0])
                 .at[2].set(b_d[0])
                 .at[3].set(b_ar[0])
                 .at[4].set(bfc_pad[0]))

    slab = jnp.concatenate([wih_e, whh_e, vec_block, whh_dT, w_tf0, wfc_pad], axis=0)
    assert slab.shape == (P + 4 * H + 8, G)
    return slab                                                # (144, 128) for H=32, P=8


@functools.partial(jax.jit, static_argnames=("output_sequence_size", "output_size"))
def seq2seq_forward(x, target, param_slab, tf_flags, *, output_sequence_size, output_size):
    """x: (B, T, I) f32, target: (B, S) f32, tf_flags: (S,) int32. Returns (B, S, O)."""
    B, T, I = x.shape
    S = output_sequence_size
    O = output_size
    G = param_slab.shape[1]
    H = G // 4
    P = param_slab.shape[0] - 4 * H - 8
    assert I == O, "model feeds x[:, -1:, :] into the decoder, so input_size must equal output_size"

    # minimal wrapper plumbing: time-major flatten + feature pad (rows [t*B:(t+1)*B] = time step t)
    x2d = jnp.pad(jnp.transpose(x, (1, 0, 2)).reshape(T * B, I), ((0, 0), (0, P - I)))

    vmem = pl.BlockSpec(memory_space=pltpu.MemorySpace.VMEM)
    smem = pl.BlockSpec(memory_space=pltpu.MemorySpace.SMEM)

    pred_flat = pl.pallas_call(
        seq2seq_kernel,
        out_shape=jax.ShapeDtypeStruct((B, S * P), jnp.float32),
        in_specs=[smem, vmem, vmem, vmem],
        out_specs=vmem,
    )(tf_flags, x2d, target, param_slab)

    return pred_flat.reshape(B, S, P)[:, :, :O]                # (B, S, O)


def seq2seq_ref(x, target, params, S, tf_flags):
    """Pure-JAX reference mirroring the PyTorch forward."""
    B, T, I = x.shape
    H = params["whh_e"].shape[1]

    def cell(x_t, h, c, wih, whh, bih, bhh):
        g = x_t @ wih.T + bih + h @ whh.T + bhh
        i = jax.nn.sigmoid(g[:, :H]); f = jax.nn.sigmoid(g[:, H:2 * H])
        gg = jnp.tanh(g[:, 2 * H:3 * H]); o = jax.nn.sigmoid(g[:, 3 * H:])
        c = f * c + i * gg
        return o * jnp.tanh(c), c

    h = jnp.zeros((B, H), jnp.float32)
    c = jnp.zeros((B, H), jnp.float32)
    for t in range(T):
        h, c = cell(x[:, t, :], h, c, params["wih_e"], params["whh_e"],
                    params["bih_e"], params["bhh_e"])
    inp = x[:, -1, :]
    preds = []
    for s in range(S):
        h, c = cell(inp, h, c, params["wih_d"], params["whh_d"],
                    params["bih_d"], params["bhh_d"])
        out = h @ params["wfc"].T + params["bfc"]
        preds.append(out)
        inp = jnp.where(tf_flags[s] > 0, target[:, s][:, None], out)
    return jnp.stack(preds, axis=1)


if __name__ == "__main__":
    key = jax.random.PRNGKey(0)
    # cfg: input_size=1, hidden_size=32, output_size=1, output_sequence_size=8
    B, T, I, H, O, S = 2, 8, 1, 32, 1, 8
    k_p, k_x, k_t, k_tf = jax.random.split(key, 4)

    params = make_params(k_p, I, H, O)
    param_slab = prepare_params(params, I, O)    # one-time weight prep/packing, outside jit

    x = jax.random.normal(k_x, (B, T, I), jnp.float32)
    target = jax.random.normal(k_t, (B, S), jnp.float32)

    teacher_forcing_ratio = 0.5
    # TODO(synk): PyTorch draws teacher-force decisions from Python's random.random() at runtime;
    # here the per-step decisions are drawn deterministically host-side and passed in as flags.
    tf_flags = (jax.random.uniform(k_tf, (S,)) < teacher_forcing_ratio).astype(jnp.int32)

    pred = seq2seq_forward(x, target, param_slab, tf_flags,
                           output_sequence_size=S, output_size=O)
    pred = jax.block_until_ready(pred)

    ref = seq2seq_ref(x, target, params, S, tf_flags)
    assert pred.shape == (B, S, O)
    assert jnp.allclose(pred, ref, atol=1e-4, rtol=1e-4), (pred, ref)
    print("KERNEL_OK")
</pallas_src>

<mosaic_0001>
module attributes {stable_mosaic.version = 11 : i64} {
  func.func @seq2seq_kernel(%arg0: memref<8xi32, #tpu.memory_space<smem>>, %arg1: memref<16x8xf32, #tpu.memory_space<vmem>>, %arg2: memref<2x8xf32, #tpu.memory_space<vmem>>, %arg3: memref<144x128xf32, #tpu.memory_space<vmem>>, %arg4: memref<2x64xf32, #tpu.memory_space<vmem>>) attributes {dimension_semantics = [], scalar_prefetch = 0 : i64, scratch_operands = 0 : i64, tpu.core_type = #tpu.core_type<tc>} {
    %c0 = arith.constant 0 : index
    %c0_0 = arith.constant 0 : index
    %0 = vector.load %arg3[%c0, %c0_0] : memref<144x128xf32, #tpu.memory_space<vmem>>, vector<8x128xf32>
    %c8 = arith.constant 8 : index
    %c0_1 = arith.constant 0 : index
    %1 = vector.load %arg3[%c8, %c0_1] : memref<144x128xf32, #tpu.memory_space<vmem>>, vector<32x128xf32>
    %c40 = arith.constant 40 : index
    %c0_2 = arith.constant 0 : index
    %2 = vector.load %arg3[%c40, %c0_2] : memref<144x128xf32, #tpu.memory_space<vmem>>, vector<1x128xf32>
    %c41 = arith.constant 41 : index
    %c0_3 = arith.constant 0 : index
    %3 = vector.load %arg3[%c41, %c0_3] : memref<144x128xf32, #tpu.memory_space<vmem>>, vector<1x128xf32>
    %c42 = arith.constant 42 : index
    %c0_4 = arith.constant 0 : index
    %4 = vector.load %arg3[%c42, %c0_4] : memref<144x128xf32, #tpu.memory_space<vmem>>, vector<1x128xf32>
    %c43 = arith.constant 43 : index
    %c0_5 = arith.constant 0 : index
    %5 = vector.load %arg3[%c43, %c0_5] : memref<144x128xf32, #tpu.memory_space<vmem>>, vector<1x128xf32>
    %c44 = arith.constant 44 : index
    %c0_6 = arith.constant 0 : index
    %6 = vector.load %arg3[%c44, %c0_6] : memref<144x128xf32, #tpu.memory_space<vmem>>, vector<1x8xf32>
    %c48 = arith.constant 48 : index
    %c0_7 = arith.constant 0 : index
    %7 = vector.load %arg3[%c48, %c0_7] : memref<144x128xf32, #tpu.memory_space<vmem>>, vector<32x128xf32>
    %c80 = arith.constant 80 : index
    %c0_8 = arith.constant 0 : index
    %8 = vector.load %arg3[%c80, %c0_8] : memref<144x128xf32, #tpu.memory_space<vmem>>, vector<32x128xf32>
    %c112 = arith.constant 112 : index
    %c0_9 = arith.constant 0 : index
    %9 = vector.load %arg3[%c112, %c0_9] : memref<144x128xf32, #tpu.memory_space<vmem>>, vector<32x8xf32>
    %10 = vector.shape_cast %4 : vector<1x128xf32> to vector<1x128xf32>
    %11 = vector.broadcast %10 : vector<1x128xf32> to vector<2x128xf32>
    %12 = vector.shape_cast %5 : vector<1x128xf32> to vector<1x128xf32>
    %13 = vector.broadcast %12 : vector<1x128xf32> to vector<2x128xf32>
    %c0_10 = arith.constant 0 : index
    %c0_11 = arith.constant 0 : index
    %14 = vector.load %arg1[%c0_10, %c0_11] : memref<16x8xf32, #tpu.memory_space<vmem>>, vector<16x8xf32>
    %cst = arith.constant dense<0.000000e+00> : vector<16x128xf32>
    %15 = tpu.matmul %14, %0, %cst {dimension_numbers = #tpu.dot_dimension_numbers<[1], [0], [0], [1], [0, 0, 1, 1], [], []>} : vector<16x8xf32>, vector<8x128xf32>, vector<16x128xf32> -> vector<16x128xf32>
    %16 = vector.broadcast %2 : vector<1x128xf32> to vector<16x128xf32>
    %17 = arith.addf %15, %16 : vector<16x128xf32>
    %cst_12 = arith.constant 0.000000e+00 : f32
    %18 = vector.broadcast %cst_12 : f32 to vector<2x32xf32>
    %cst_13 = arith.constant 0.000000e+00 : f32
    %19 = vector.broadcast %cst_13 : f32 to vector<2x32xf32>
    %20 = vector.extract_strided_slice %17 {offsets = [0, 0], sizes = [2, 128], strides = [1, 1]} : vector<16x128xf32> to vector<2x128xf32>
    %cst_14 = arith.constant dense<0.000000e+00> : vector<2x128xf32>
    %21 = tpu.matmul %18, %1, %cst_14 {dimension_numbers = #tpu.dot_dimension_numbers<[1], [0], [0], [1], [0, 0, 1, 1], [], []>} : vector<2x32xf32>, vector<32x128xf32>, vector<2x128xf32> -> vector<2x128xf32>
    %22 = arith.addf %20, %21 : vector<2x128xf32>
    %23 = arith.negf %22 : vector<2x128xf32>
    %24 = math.exp %23 : vector<2x128xf32>
    %cst_15 = arith.constant 1.000000e+00 : f32
    %25 = vector.broadcast %cst_15 : f32 to vector<2x128xf32>
    %26 = arith.addf %25, %24 : vector<2x128xf32>
    %27 = arith.divf %25, %26 : vector<2x128xf32>
    %28 = vector.extract_strided_slice %27 {offsets = [0, 0], sizes = [2, 32], strides = [1, 1]} : vector<2x128xf32> to vector<2x32xf32>
    %29 = vector.extract_strided_slice %27 {offsets = [0, 32], sizes = [2, 32], strides = [1, 1]} : vector<2x128xf32> to vector<2x32xf32>
    %30 = vector.extract_strided_slice %27 {offsets = [0, 96], sizes = [2, 32], strides = [1, 1]} : vector<2x128xf32> to vector<2x32xf32>
    %31 = vector.extract_strided_slice %22 {offsets = [0, 64], sizes = [2, 32], strides = [1, 1]} : vector<2x128xf32> to vector<2x32xf32>
    %32 = math.tanh %31 : vector<2x32xf32>
    %33 = arith.mulf %29, %19 : vector<2x32xf32>
    %34 = arith.mulf %28, %32 : vector<2x32xf32>
    %35 = arith.addf %33, %34 : vector<2x32xf32>
    %36 = math.tanh %35 : vector<2x32xf32>
    %37 = arith.mulf %30, %36 : vector<2x32xf32>
    %38 = vector.extract_strided_slice %17 {offsets = [2, 0], sizes = [2, 128], strides = [1, 1]} : vector<16x128xf32> to vector<2x128xf32>
    %cst_16 = arith.constant dense<0.000000e+00> : vector<2x128xf32>
    %39 = tpu.matmul %37, %1, %cst_16 {dimension_numbers = #tpu.dot_dimension_numbers<[1], [0], [0], [1], [0, 0, 1, 1], [], []>} : vector<2x32xf32>, vector<32x128xf32>, vector<2x128xf32> -> vector<2x128xf32>
    %40 = arith.addf %38, %39 : vector<2x128xf32>
    %41 = arith.negf %40 : vector<2x128xf32>
    %42 = math.exp %41 : vector<2x128xf32>
    %cst_17 = arith.constant 1.000000e+00 : f32
    %43 = vector.broadcast %cst_17 : f32 to vector<2x128xf32>
    %44 = arith.addf %43, %42 : vector<2x128xf32>
    %45 = arith.divf %43, %44 : vector<2x128xf32>
    %46 = vector.extract_strided_slice %45 {offsets = [0, 0], sizes = [2, 32], strides = [1, 1]} : vector<2x128xf32> to vector<2x32xf32>
    %47 = vector.extract_strided_slice %45 {offsets = [0, 32], sizes = [2, 32], strides = [1, 1]} : vector<2x128xf32> to vector<2x32xf32>
    %48 = vector.extract_strided_slice %45 {offsets = [0, 96], sizes = [2, 32], strides = [1, 1]} : vector<2x128xf32> to vector<2x32xf32>
    %49 = vector.extract_strided_slice %40 {offsets = [0, 64], sizes = [2, 32], strides = [1, 1]} : vector<2x128xf32> to vector<2x32xf32>
    %50 = math.tanh %49 : vector<2x32xf32>
    %51 = arith.mulf %47, %35 : vector<2x32xf32>
    %52 = arith.mulf %46, %50 : vector<2x32xf32>
    %53 = arith.addf %51, %52 : vector<2x32xf32>
    %54 = math.tanh %53 : vector<2x32xf32>
    %55 = arith.mulf %48, %54 : vector<2x32xf32>
    %56 = vector.extract_strided_slice %17 {offsets = [4, 0], sizes = [2, 128], strides = [1, 1]} : vector<16x128xf32> to vector<2x128xf32>
    %cst_18 = arith.constant dense<0.000000e+00> : vector<2x128xf32>
    %57 = tpu.matmul %55, %1, %cst_18 {dimension_numbers = #tpu.dot_dimension_numbers<[1], [0], [0], [1], [0, 0, 1, 1], [], []>} : vector<2x32xf32>, vector<32x128xf32>, vector<2x128xf32> -> vector<2x128xf32>
    %58 = arith.addf %56, %57 : vector<2x128xf32>
    %59 = arith.negf %58 : vector<2x128xf32>
    %60 = math.exp %59 : vector<2x128xf32>
    %cst_19 = arith.constant 1.000000e+00 : f32
    %61 = vector.broadcast %cst_19 : f32 to vector<2x128xf32>
    %62 = arith.addf %61, %60 : vector<2x128xf32>
    %63 = arith.divf %61, %62 : vector<2x128xf32>
    %64 = vector.extract_strided_slice %63 {offsets = [0, 0], sizes = [2, 32], strides = [1, 1]} : vector<2x128xf32> to vector<2x32xf32>
    %65 = vector.extract_strided_slice %63 {offsets = [0, 32], sizes = [2, 32], strides = [1, 1]} : vector<2x128xf32> to vector<2x32xf32>
    %66 = vector.extract_strided_slice %63 {offsets = [0, 96], sizes = [2, 32], strides = [1, 1]} : vector<2x128xf32> to vector<2x32xf32>
    %67 = vector.extract_strided_slice %58 {offsets = [0, 64], sizes = [2, 32], strides = [1, 1]} : vector<2x128xf32> to vector<2x32xf32>
    %68 = math.tanh %67 : vector<2x32xf32>
    %69 = arith.mulf %65, %53 : vector<2x32xf32>
    %70 = arith.mulf %64, %68 : vector<2x32xf32>
    %71 = arith.addf %69, %70 : vector<2x32xf32>
    %72 = math.tanh %71 : vector<2x32xf32>
    %73 = arith.mulf %66, %72 : vector<2x32xf32>
    %74 = vector.extract_strided_slice %17 {offsets = [6, 0], sizes = [2, 128], strides = [1, 1]} : vector<16x128xf32> to vector<2x128xf32>
    %cst_20 = arith.constant dense<0.000000e+00> : vector<2x128xf32>
    %75 = tpu.matmul %73, %1, %cst_20 {dimension_numbers = #tpu.dot_dimension_numbers<[1], [0], [0], [1], [0, 0, 1, 1], [], []>} : vector<2x32xf32>, vector<32x128xf32>, vector<2x128xf32> -> vector<2x128xf32>
    %76 = arith.addf %74, %75 : vector<2x128xf32>
    %77 = arith.negf %76 : vector<2x128xf32>
    %78 = math.exp %77 : vector<2x128xf32>
    %cst_21 = arith.constant 1.000000e+00 : f32
    %79 = vector.broadcast %cst_21 : f32 to vector<2x128xf32>
    %80 = arith.addf %79, %78 : vector<2x128xf32>
    %81 = arith.divf %79, %80 : vector<2x128xf32>
    %82 = vector.extract_strided_slice %81 {offsets = [0, 0], sizes = [2, 32], strides = [1, 1]} : vector<2x128xf32> to vector<2x32xf32>
    %83 = vector.extract_strided_slice %81 {offsets = [0, 32], sizes = [2, 32], strides = [1, 1]} : vector<2x128xf32> to vector<2x32xf32>
    %84 = vector.extract_strided_slice %81 {offsets = [0, 96], sizes = [2, 32], strides = [1, 1]} : vector<2x128xf32> to vector<2x32xf32>
    %85 = vector.extract_strided_slice %76 {offsets = [0, 64], sizes = [2, 32], strides = [1, 1]} : vector<2x128xf32> to vector<2x32xf32>
    %86 = math.tanh %85 : vector<2x32xf32>
    %87 = arith.mulf %83, %71 : vector<2x32xf32>
    %88 = arith.mulf %82, %86 : vector<2x32xf32>
    %89 = arith.addf %87, %88 : vector<2x32xf32>
    %90 = math.tanh %89 : vector<2x32xf32>
    %91 = arith.mulf %84, %90 : vector<2x32xf32>
    %92 = vector.extract_strided_slice %17 {offsets = [8, 0], sizes = [2, 128], strides = [1, 1]} : vector<16x128xf32> to vector<2x128xf32>
    %cst_22 = arith.constant dense<0.000000e+00> : vector<2x128xf32>
    %93 = tpu.matmul %91, %1, %cst_22 {dimension_numbers = #tpu.dot_dimension_numbers<[1], [0], [0], [1], [0, 0, 1, 1], [], []>} : vector<2x32xf32>, vector<32x128xf32>, vector<2x128xf32> -> vector<2x128xf32>
    %94 = arith.addf %92, %93 : vector<2x128xf32>
    %95 = arith.negf %94 : vector<2x128xf32>
    %96 = math.exp %95 : vector<2x128xf32>
    %cst_23 = arith.constant 1.000000e+00 : f32
    %97 = vector.broadcast %cst_23 : f32 to vector<2x128xf32>
    %98 = arith.addf %97, %96 : vector<2x128xf32>
    %99 = arith.divf %97, %98 : vector<2x128xf32>
    %100 = vector.extract_strided_slice %99 {offsets = [0, 0], sizes = [2, 32], strides = [1, 1]} : vector<2x128xf32> to vector<2x32xf32>
    %101 = vector.extract_strided_slice %99 {offsets = [0, 32], sizes = [2, 32], strides = [1, 1]} : vector<2x128xf32> to vector<2x32xf32>
    %102 = vector.extract_strided_slice %99 {offsets = [0, 96], sizes = [2, 32], strides = [1, 1]} : vector<2x128xf32> to vector<2x32xf32>
    %103 = vector.extract_strided_slice %94 {offsets = [0, 64], sizes = [2, 32], strides = [1, 1]} : vector<2x128xf32> to vector<2x32xf32>
    %104 = math.tanh %103 : vector<2x32xf32>
    %105 = arith.mulf %101, %89 : vector<2x32xf32>
    %106 = arith.mulf %100, %104 : vector<2x32xf32>
    %107 = arith.addf %105, %106 : vector<2x32xf32>
    %108 = math.tanh %107 : vector<2x32xf32>
    %109 = arith.mulf %102, %108 : vector<2x32xf32>
    %110 = vector.extract_strided_slice %17 {offsets = [10, 0], sizes = [2, 128], strides = [1, 1]} : vector<16x128xf32> to vector<2x128xf32>
    %cst_24 = arith.constant dense<0.000000e+00> : vector<2x128xf32>
    %111 = tpu.matmul %109, %1, %cst_24 {dimension_numbers = #tpu.dot_dimension_numbers<[1], [0], [0], [1], [0, 0, 1, 1], [], []>} : vector<2x32xf32>, vector<32x128xf32>, vector<2x128xf32> -> vector<2x128xf32>
    %112 = arith.addf %110, %111 : vector<2x128xf32>
    %113 = arith.negf %112 : vector<2x128xf32>
    %114 = math.exp %113 : vector<2x128xf32>
    %cst_25 = arith.constant 1.000000e+00 : f32
    %115 = vector.broadcast %cst_25 : f32 to vector<2x128xf32>
    %116 = arith.addf %115, %114 : vector<2x128xf32>
    %117 = arith.divf %115, %116 : vector<2x128xf32>
    %118 = vector.extract_strided_slice %117 {offsets = [0, 0], sizes = [2, 32], strides = [1, 1]} : vector<2x128xf32> to vector<2x32xf32>
    %119 = vector.extract_strided_slice %117 {offsets = [0, 32], sizes = [2, 32], strides = [1, 1]} : vector<2x128xf32> to vector<2x32xf32>
    %120 = vector.extract_strided_slice %117 {offsets = [0, 96], sizes = [2, 32], strides = [1, 1]} : vector<2x128xf32> to vector<2x32xf32>
    %121 = vector.extract_strided_slice %112 {offsets = [0, 64], sizes = [2, 32], strides = [1, 1]} : vector<2x128xf32> to vector<2x32xf32>
    %122 = math.tanh %121 : vector<2x32xf32>
    %123 = arith.mulf %119, %107 : vector<2x32xf32>
    %124 = arith.mulf %118, %122 : vector<2x32xf32>
    %125 = arith.addf %123, %124 : vector<2x32xf32>
    %126 = math.tanh %125 : vector<2x32xf32>
    %127 = arith.mulf %120, %126 : vector<2x32xf32>
    %128 = vector.extract_strided_slice %17 {offsets = [12, 0], sizes = [2, 128], strides = [1, 1]} : vector<16x128xf32> to vector<2x128xf32>
    %cst_26 = arith.constant dense<0.000000e+00> : vector<2x128xf32>
    %129 = tpu.matmul %127, %1, %cst_26 {dimension_numbers = #tpu.dot_dimension_numbers<[1], [0], [0], [1], [0, 0, 1, 1], [], []>} : vector<2x32xf32>, vector<32x128xf32>, vector<2x128xf32> -> vector<2x128xf32>
    %130 = arith.addf %128, %129 : vector<2x128xf32>
    %131 = arith.negf %130 : vector<2x128xf32>
    %132 = math.exp %131 : vector<2x128xf32>
    %cst_27 = arith.constant 1.000000e+00 : f32
    %133 = vector.broadcast %cst_27 : f32 to vector<2x128xf32>
    %134 = arith.addf %133, %132 : vector<2x128xf32>
    %135 = arith.divf %133, %134 : vector<2x128xf32>
    %136 = vector.extract_strided_slice %135 {offsets = [0, 0], sizes = [2, 32], strides = [1, 1]} : vector<2x128xf32> to vector<2x32xf32>
    %137 = vector.extract_strided_slice %135 {offsets = [0, 32], sizes = [2, 32], strides = [1, 1]} : vector<2x128xf32> to vector<2x32xf32>
    %138 = vector.extract_strided_slice %135 {offsets = [0, 96], sizes = [2, 32], strides = [1, 1]} : vector<2x128xf32> to vector<2x32xf32>
    %139 = vector.extract_strided_slice %130 {offsets = [0, 64], sizes = [2, 32], strides = [1, 1]} : vector<2x128xf32> to vector<2x32xf32>
    %140 = math.tanh %139 : vector<2x32xf32>
    %141 = arith.mulf %137, %125 : vector<2x32xf32>
    %142 = arith.mulf %136, %140 : vector<2x32xf32>
    %143 = arith.addf %141, %142 : vector<2x32xf32>
    %144 = math.tanh %143 : vector<2x32xf32>
    %145 = arith.mulf %138, %144 : vector<2x32xf32>
    %146 = vector.extract_strided_slice %17 {offsets = [14, 0], sizes = [2, 128], strides = [1, 1]} : vector<16x128xf32> to vector<2x128xf32>
    %cst_28 = arith.constant dense<0.000000e+00> : vector<2x128xf32>
    %147 = tpu.matmul %145, %1, %cst_28 {dimension_numbers = #tpu.dot_dimension_numbers<[1], [0], [0], [1], [0, 0, 1, 1], [], []>} : vector<2x32xf32>, vector<32x128xf32>, vector<2x128xf32> -> vector<2x128xf32>
    %148 = arith.addf %146, %147 : vector<2x128xf32>
    %149 = arith.negf %148 : vector<2x128xf32>
    %150 = math.exp %149 : vector<2x128xf32>
    %cst_29 = arith.constant 1.000000e+00 : f32
    %151 = vector.broadcast %cst_29 : f32 to vector<2x128xf32>
    %152 = arith.addf %151, %150 : vector<2x128xf32>
    %153 = arith.divf %151, %152 : vector<2x128xf32>
    %154 = vector.extract_strided_slice %153 {offsets = [0, 0], sizes = [2, 32], strides = [1, 1]} : vector<2x128xf32> to vector<2x32xf32>
    %155 = vector.extract_strided_slice %153 {offsets = [0, 32], sizes = [2, 32], strides = [1, 1]} : vector<2x128xf32> to vector<2x32xf32>
    %156 = vector.extract_strided_slice %153 {offsets = [0, 96], sizes = [2, 32], strides = [1, 1]} : vector<2x128xf32> to vector<2x32xf32>
    %157 = vector.extract_strided_slice %148 {offsets = [0, 64], sizes = [2, 32], strides = [1, 1]} : vector<2x128xf32> to vector<2x32xf32>
    %158 = math.tanh %157 : vector<2x32xf32>
    %159 = arith.mulf %155, %143 : vector<2x32xf32>
    %160 = arith.mulf %154, %158 : vector<2x32xf32>
    %161 = arith.addf %159, %160 : vector<2x32xf32>
    %162 = math.tanh %161 : vector<2x32xf32>
    %163 = arith.mulf %156, %162 : vector<2x32xf32>
    %c0_30 = arith.constant 0 : index
    %c0_31 = arith.constant 0 : index
    %164 = vector.load %arg2[%c0_30, %c0_31] : memref<2x8xf32, #tpu.memory_space<vmem>>, vector<2x8xf32>
    %c14 = arith.constant 14 : index
    %c0_32 = arith.constant 0 : index
    %165 = vector.load %arg1[%c14, %c0_32] : memref<16x8xf32, #tpu.memory_space<vmem>>, vector<2x8xf32>
    %166 = vector.extract_strided_slice %165 {offsets = [0, 0], sizes = [2, 1], strides = [1, 1]} : vector<2x8xf32> to vector<2x1xf32>
    %167 = vector.broadcast %166 : vector<2x1xf32> to vector<2x128xf32>
    %168 = vector.broadcast %3 : vector<1x128xf32> to vector<2x128xf32>
    %169 = arith.mulf %167, %168 : vector<2x128xf32>
    %170 = arith.addf %169, %11 : vector<2x128xf32>
    %cst_33 = arith.constant dense<0.000000e+00> : vector<2x128xf32>
    %171 = tpu.matmul %163, %7, %cst_33 {dimension_numbers = #tpu.dot_dimension_numbers<[1], [0], [0], [1], [0, 0, 1, 1], [], []>} : vector<2x32xf32>, vector<32x128xf32>, vector<2x128xf32> -> vector<2x128xf32>
    %172 = arith.addf %171, %170 : vector<2x128xf32>
    %173 = arith.negf %172 : vector<2x128xf32>
    %174 = math.exp %173 : vector<2x128xf32>
    %cst_34 = arith.constant 1.000000e+00 : f32
    %175 = vector.broadcast %cst_34 : f32 to vector<2x128xf32>
    %176 = arith.addf %175, %174 : vector<2x128xf32>
    %177 = arith.divf %175, %176 : vector<2x128xf32>
    %178 = vector.extract_strided_slice %177 {offsets = [0, 0], sizes = [2, 32], strides = [1, 1]} : vector<2x128xf32> to vector<2x32xf32>
    %179 = vector.extract_strided_slice %177 {offsets = [0, 32], sizes = [2, 32], strides = [1, 1]} : vector<2x128xf32> to vector<2x32xf32>
    %180 = vector.extract_strided_slice %177 {offsets = [0, 96], sizes = [2, 32], strides = [1, 1]} : vector<2x128xf32> to vector<2x32xf32>
    %181 = vector.extract_strided_slice %172 {offsets = [0, 64], sizes = [2, 32], strides = [1, 1]} : vector<2x128xf32> to vector<2x32xf32>
    %182 = math.tanh %181 : vector<2x32xf32>
    %183 = arith.mulf %179, %161 : vector<2x32xf32>
    %184 = arith.mulf %178, %182 : vector<2x32xf32>
    %185 = arith.addf %183, %184 : vector<2x32xf32>
    %186 = math.tanh %185 : vector<2x32xf32>
    %187 = arith.mulf %180, %186 : vector<2x32xf32>
    %c0_35 = arith.constant 0 : index
    %188 = memref.load %arg0[%c0_35] : memref<8xi32, #tpu.memory_space<smem>>
    %c0_i32 = arith.constant 0 : i32
    %189 = arith.cmpi sgt, %188, %c0_i32 : i32
    %190 = vector.extract_strided_slice %164 {offsets = [0, 0], sizes = [2, 1], strides = [1, 1]} : vector<2x8xf32> to vector<2x1xf32>
    %191 = vector.broadcast %190 : vector<2x1xf32> to vector<2x128xf32>
    %192 = vector.broadcast %3 : vector<1x128xf32> to vector<2x128xf32>
    %193 = arith.mulf %191, %192 : vector<2x128xf32>
    %194 = arith.addf %193, %11 : vector<2x128xf32>
    %195 = arith.select %189, %194, %13 : vector<2x128xf32>
    %196 = arith.select %189, %7, %8 : vector<32x128xf32>
    %cst_36 = arith.constant dense<0.000000e+00> : vector<2x128xf32>
    %197 = tpu.matmul %187, %196, %cst_36 {dimension_numbers = #tpu.dot_dimension_numbers<[1], [0], [0], [1], [0, 0, 1, 1], [], []>} : vector<2x32xf32>, vector<32x128xf32>, vector<2x128xf32> -> vector<2x128xf32>
    %198 = arith.addf %197, %195 : vector<2x128xf32>
    %199 = arith.negf %198 : vector<2x128xf32>
    %200 = math.exp %199 : vector<2x128xf32>
    %cst_37 = arith.constant 1.000000e+00 : f32
    %201 = vector.broadcast %cst_37 : f32 to vector<2x128xf32>
    %202 = arith.addf %201, %200 : vector<2x128xf32>
    %203 = arith.divf %201, %202 : vector<2x128xf32>
    %204 = vector.extract_strided_slice %203 {offsets = [0, 0], sizes = [2, 32], strides = [1, 1]} : vector<2x128xf32> to vector<2x32xf32>
    %205 = vector.extract_strided_slice %203 {offsets = [0, 32], sizes = [2, 32], strides = [1, 1]} : vector<2x128xf32> to vector<2x32xf32>
    %206 = vector.extract_strided_slice %203 {offsets = [0, 96], sizes = [2, 32], strides = [1, 1]} : vector<2x128xf32> to vector<2x32xf32>
    %207 = vector.extract_strided_slice %198 {offsets = [0, 64], sizes = [2, 32], strides = [1, 1]} : vector<2x128xf32> to vector<2x32xf32>
    %208 = math.tanh %207 : vector<2x32xf32>
    %209 = arith.mulf %205, %185 : vector<2x32xf32>
    %210 = arith.mulf %204, %208 : vector<2x32xf32>
    %211 = arith.addf %209, %210 : vector<2x32xf32>
    %212 = math.tanh %211 : vector<2x32xf32>
    %213 = arith.mulf %206, %212 : vector<2x32xf32>
    %c1 = arith.constant 1 : index
    %214 = memref.load %arg0[%c1] : memref<8xi32, #tpu.memory_space<smem>>
    %c0_i32_38 = arith.constant 0 : i32
    %215 = arith.cmpi sgt, %214, %c0_i32_38 : i32
    %216 = vector.extract_strided_slice %164 {offsets = [0, 1], sizes = [2, 1], strides = [1, 1]} : vector<2x8xf32> to vector<2x1xf32>
    %217 = vector.broadcast %216 : vector<2x1xf32> to vector<2x128xf32>
    %218 = vector.broadcast %3 : vector<1x128xf32> to vector<2x128xf32>
    %219 = arith.mulf %217, %218 : vector<2x128xf32>
    %220 = arith.addf %219, %11 : vector<2x128xf32>
    %221 = arith.select %215, %220, %13 : vector<2x128xf32>
    %222 = arith.select %215, %7, %8 : vector<32x128xf32>
    %cst_39 = arith.constant dense<0.000000e+00> : vector<2x128xf32>
    %223 = tpu.matmul %213, %222, %cst_39 {dimension_numbers = #tpu.dot_dimension_numbers<[1], [0], [0], [1], [0, 0, 1, 1], [], []>} : vector<2x32xf32>, vector<32x128xf32>, vector<2x128xf32> -> vector<2x128xf32>
    %224 = arith.addf %223, %221 : vector<2x128xf32>
    %225 = arith.negf %224 : vector<2x128xf32>
    %226 = math.exp %225 : vector<2x128xf32>
    %cst_40 = arith.constant 1.000000e+00 : f32
    %227 = vector.broadcast %cst_40 : f32 to vector<2x128xf32>
    %228 = arith.addf %227, %226 : vector<2x128xf32>
    %229 = arith.divf %227, %228 : vector<2x128xf32>
    %230 = vector.extract_strided_slice %229 {offsets = [0, 0], sizes = [2, 32], strides = [1, 1]} : vector<2x128xf32> to vector<2x32xf32>
    %231 = vector.extract_strided_slice %229 {offsets = [0, 32], sizes = [2, 32], strides = [1, 1]} : vector<2x128xf32> to vector<2x32xf32>
    %232 = vector.extract_strided_slice %229 {offsets = [0, 96], sizes = [2, 32], strides = [1, 1]} : vector<2x128xf32> to vector<2x32xf32>
    %233 = vector.extract_strided_slice %224 {offsets = [0, 64], sizes = [2, 32], strides = [1, 1]} : vector<2x128xf32> to vector<2x32xf32>
    %234 = math.tanh %233 : vector<2x32xf32>
    %235 = arith.mulf %231, %211 : vector<2x32xf32>
    %236 = arith.mulf %230, %234 : vector<2x32xf32>
    %237 = arith.addf %235, %236 : vector<2x32xf32>
    %238 = math.tanh %237 : vector<2x32xf32>
    %239 = arith.mulf %232, %238 : vector<2x32xf32>
    %c2 = arith.constant 2 : index
    %240 = memref.load %arg0[%c2] : memref<8xi32, #tpu.memory_space<smem>>
    %c0_i32_41 = arith.constant 0 : i32
    %241 = arith.cmpi sgt, %240, %c0_i32_41 : i32
    %242 = vector.extract_strided_slice %164 {offsets = [0, 2], sizes = [2, 1], strides = [1, 1]} : vector<2x8xf32> to vector<2x1xf32>
    %243 = vector.broadcast %242 : vector<2x1xf32> to vector<2x128xf32>
    %244 = vector.broadcast %3 : vector<1x128xf32> to vector<2x128xf32>
    %245 = arith.mulf %243, %244 : vector<2x128xf32>
    %246 = arith.addf %245, %11 : vector<2x128xf32>
    %247 = arith.select %241, %246, %13 : vector<2x128xf32>
    %248 = arith.select %241, %7, %8 : vector<32x128xf32>
    %cst_42 = arith.constant dense<0.000000e+00> : vector<2x128xf32>
    %249 = tpu.matmul %239, %248, %cst_42 {dimension_numbers = #tpu.dot_dimension_numbers<[1], [0], [0], [1], [0, 0, 1, 1], [], []>} : vector<2x32xf32>, vector<32x128xf32>, vector<2x128xf32> -> vector<2x128xf32>
    %250 = arith.addf %249, %247 : vector<2x128xf32>
    %251 = arith.negf %250 : vector<2x128xf32>
    %252 = math.exp %251 : vector<2x128xf32>
    %cst_43 = arith.constant 1.000000e+00 : f32
    %253 = vector.broadcast %cst_43 : f32 to vector<2x128xf32>
    %254 = arith.addf %253, %252 : vector<2x128xf32>
    %255 = arith.divf %253, %254 : vector<2x128xf32>
    %256 = vector.extract_strided_slice %255 {offsets = [0, 0], sizes = [2, 32], strides = [1, 1]} : vector<2x128xf32> to vector<2x32xf32>
    %257 = vector.extract_strided_slice %255 {offsets = [0, 32], sizes = [2, 32], strides = [1, 1]} : vector<2x128xf32> to vector<2x32xf32>
    %258 = vector.extract_strided_slice %255 {offsets = [0, 96], sizes = [2, 32], strides = [1, 1]} : vector<2x128xf32> to vector<2x32xf32>
    %259 = vector.extract_strided_slice %250 {offsets = [0, 64], sizes = [2, 32], strides = [1, 1]} : vector<2x128xf32> to vector<2x32xf32>
    %260 = math.tanh %259 : vector<2x32xf32>
    %261 = arith.mulf %257, %237 : vector<2x32xf32>
    %262 = arith.mulf %256, %260 : vector<2x32xf32>
    %263 = arith.addf %261, %262 : vector<2x32xf32>
    %264 = math.tanh %263 : vector<2x32xf32>
    %265 = arith.mulf %258, %264 : vector<2x32xf32>
    %c3 = arith.constant 3 : index
    %266 = memref.load %arg0[%c3] : memref<8xi32, #tpu.memory_space<smem>>
    %c0_i32_44 = arith.constant 0 : i32
    %267 = arith.cmpi sgt, %266, %c0_i32_44 : i32
    %268 = vector.extract_strided_slice %164 {offsets = [0, 3], sizes = [2, 1], strides = [1, 1]} : vector<2x8xf32> to vector<2x1xf32>
    %269 = vector.broadcast %268 : vector<2x1xf32> to vector<2x128xf32>
    %270 = vector.broadcast %3 : vector<1x128xf32> to vector<2x128xf32>
    %271 = arith.mulf %269, %270 : vector<2x128xf32>
    %272 = arith.addf %271, %11 : vector<2x128xf32>
    %273 = arith.select %267, %272, %13 : vector<2x128xf32>
    %274 = arith.select %267, %7, %8 : vector<32x128xf32>
    %cst_45 = arith.constant dense<0.000000e+00> : vector<2x128xf32>
    %275 = tpu.matmul %265, %274, %cst_45 {dimension_numbers = #tpu.dot_dimension_numbers<[1], [0], [0], [1], [0, 0, 1, 1], [], []>} : vector<2x32xf32>, vector<32x128xf32>, vector<2x128xf32> -> vector<2x128xf32>
    %276 = arith.addf %275, %273 : vector<2x128xf32>
    %277 = arith.negf %276 : vector<2x128xf32>
    %278 = math.exp %277 : vector<2x128xf32>
    %cst_46 = arith.constant 1.000000e+00 : f32
    %279 = vector.broadcast %cst_46 : f32 to vector<2x128xf32>
    %280 = arith.addf %279, %278 : vector<2x128xf32>
    %281 = arith.divf %279, %280 : vector<2x128xf32>
    %282 = vector.extract_strided_slice %281 {offsets = [0, 0], sizes = [2, 32], strides = [1, 1]} : vector<2x128xf32> to vector<2x32xf32>
    %283 = vector.extract_strided_slice %281 {offsets = [0, 32], sizes = [2, 32], strides = [1, 1]} : vector<2x128xf32> to vector<2x32xf32>
    %284 = vector.extract_strided_slice %281 {offsets = [0, 96], sizes = [2, 32], strides = [1, 1]} : vector<2x128xf32> to vector<2x32xf32>
    %285 = vector.extract_strided_slice %276 {offsets = [0, 64], sizes = [2, 32], strides = [1, 1]} : vector<2x128xf32> to vector<2x32xf32>
    %286 = math.tanh %285 : vector<2x32xf32>
    %287 = arith.mulf %283, %263 : vector<2x32xf32>
    %288 = arith.mulf %282, %286 : vector<2x32xf32>
    %289 = arith.addf %287, %288 : vector<2x32xf32>
    %290 = math.tanh %289 : vector<2x32xf32>
    %291 = arith.mulf %284, %290 : vector<2x32xf32>
    %c4 = arith.constant 4 : index
    %292 = memref.load %arg0[%c4] : memref<8xi32, #tpu.memory_space<smem>>
    %c0_i32_47 = arith.constant 0 : i32
    %293 = arith.cmpi sgt, %292, %c0_i32_47 : i32
    %294 = vector.extract_strided_slice %164 {offsets = [0, 4], sizes = [2, 1], strides = [1, 1]} : vector<2x8xf32> to vector<2x1xf32>
    %295 = vector.broadcast %294 : vector<2x1xf32> to vector<2x128xf32>
    %296 = vector.broadcast %3 : vector<1x128xf32> to vector<2x128xf32>
    %297 = arith.mulf %295, %296 : vector<2x128xf32>
    %298 = arith.addf %297, %11 : vector<2x128xf32>
    %299 = arith.select %293, %298, %13 : vector<2x128xf32>
    %300 = arith.select %293, %7, %8 : vector<32x128xf32>
    %cst_48 = arith.constant dense<0.000000e+00> : vector<2x128xf32>
    %301 = tpu.matmul %291, %300, %cst_48 {dimension_numbers = #tpu.dot_dimension_numbers<[1], [0], [0], [1], [0, 0, 1, 1], [], []>} : vector<2x32xf32>, vector<32x128xf32>, vector<2x128xf32> -> vector<2x128xf32>
    %302 = arith.addf %301, %299 : vector<2x128xf32>
    %303 = arith.negf %302 : vector<2x128xf32>
    %304 = math.exp %303 : vector<2x128xf32>
    %cst_49 = arith.constant 1.000000e+00 : f32
    %305 = vector.broadcast %cst_49 : f32 to vector<2x128xf32>
    %306 = arith.addf %305, %304 : vector<2x128xf32>
    %307 = arith.divf %305, %306 : vector<2x128xf32>
    %308 = vector.extract_strided_slice %307 {offsets = [0, 0], sizes = [2, 32], strides = [1, 1]} : vector<2x128xf32> to vector<2x32xf32>
    %309 = vector.extract_strided_slice %307 {offsets = [0, 32], sizes = [2, 32], strides = [1, 1]} : vector<2x128xf32> to vector<2x32xf32>
    %310 = vector.extract_strided_slice %307 {offsets = [0, 96], sizes = [2, 32], strides = [1, 1]} : vector<2x128xf32> to vector<2x32xf32>
    %311 = vector.extract_strided_slice %302 {offsets = [0, 64], sizes = [2, 32], strides = [1, 1]} : vector<2x128xf32> to vector<2x32xf32>
    %312 = math.tanh %311 : vector<2x32xf32>
    %313 = arith.mulf %309, %289 : vector<2x32xf32>
    %314 = arith.mulf %308, %312 : vector<2x32xf32>
    %315 = arith.addf %313, %314 : vector<2x32xf32>
    %316 = math.tanh %315 : vector<2x32xf32>
    %317 = arith.mulf %310, %316 : vector<2x32xf32>
    %c5 = arith.constant 5 : index
    %318 = memref.load %arg0[%c5] : memref<8xi32, #tpu.memory_space<smem>>
    %c0_i32_50 = arith.constant 0 : i32
    %319 = arith.cmpi sgt, %318, %c0_i32_50 : i32
    %320 = vector.extract_strided_slice %164 {offsets = [0, 5], sizes = [2, 1], strides = [1, 1]} : vector<2x8xf32> to vector<2x1xf32>
    %321 = vector.broadcast %320 : vector<2x1xf32> to vector<2x128xf32>
    %322 = vector.broadcast %3 : vector<1x128xf32> to vector<2x128xf32>
    %323 = arith.mulf %321, %322 : vector<2x128xf32>
    %324 = arith.addf %323, %11 : vector<2x128xf32>
    %325 = arith.select %319, %324, %13 : vector<2x128xf32>
    %326 = arith.select %319, %7, %8 : vector<32x128xf32>
    %cst_51 = arith.constant dense<0.000000e+00> : vector<2x128xf32>
    %327 = tpu.matmul %317, %326, %cst_51 {dimension_numbers = #tpu.dot_dimension_numbers<[1], [0], [0], [1], [0, 0, 1, 1], [], []>} : vector<2x32xf32>, vector<32x128xf32>, vector<2x128xf32> -> vector<2x128xf32>
    %328 = arith.addf %327, %325 : vector<2x128xf32>
    %329 = arith.negf %328 : vector<2x128xf32>
    %330 = math.exp %329 : vector<2x128xf32>
    %cst_52 = arith.constant 1.000000e+00 : f32
    %331 = vector.broadcast %cst_52 : f32 to vector<2x128xf32>
    %332 = arith.addf %331, %330 : vector<2x128xf32>
    %333 = arith.divf %331, %332 : vector<2x128xf32>
    %334 = vector.extract_strided_slice %333 {offsets = [0, 0], sizes = [2, 32], strides = [1, 1]} : vector<2x128xf32> to vector<2x32xf32>
    %335 = vector.extract_strided_slice %333 {offsets = [0, 32], sizes = [2, 32], strides = [1, 1]} : vector<2x128xf32> to vector<2x32xf32>
    %336 = vector.extract_strided_slice %333 {offsets = [0, 96], sizes = [2, 32], strides = [1, 1]} : vector<2x128xf32> to vector<2x32xf32>
    %337 = vector.extract_strided_slice %328 {offsets = [0, 64], sizes = [2, 32], strides = [1, 1]} : vector<2x128xf32> to vector<2x32xf32>
    %338 = math.tanh %337 : vector<2x32xf32>
    %339 = arith.mulf %335, %315 : vector<2x32xf32>
    %340 = arith.mulf %334, %338 : vector<2x32xf32>
    %341 = arith.addf %339, %340 : vector<2x32xf32>
    %342 = math.tanh %341 : vector<2x32xf32>
    %343 = arith.mulf %336, %342 : vector<2x32xf32>
    %c6 = arith.constant 6 : index
    %344 = memref.load %arg0[%c6] : memref<8xi32, #tpu.memory_space<smem>>
    %c0_i32_53 = arith.constant 0 : i32
    %345 = arith.cmpi sgt, %344, %c0_i32_53 : i32
    %346 = vector.extract_strided_slice %164 {offsets = [0, 6], sizes = [2, 1], strides = [1, 1]} : vector<2x8xf32> to vector<2x1xf32>
    %347 = vector.broadcast %346 : vector<2x1xf32> to vector<2x128xf32>
    %348 = vector.broadcast %3 : vector<1x128xf32> to vector<2x128xf32>
    %349 = arith.mulf %347, %348 : vector<2x128xf32>
    %350 = arith.addf %349, %11 : vector<2x128xf32>
    %351 = arith.select %345, %350, %13 : vector<2x128xf32>
    %352 = arith.select %345, %7, %8 : vector<32x128xf32>
    %cst_54 = arith.constant dense<0.000000e+00> : vector<2x128xf32>
    %353 = tpu.matmul %343, %352, %cst_54 {dimension_numbers = #tpu.dot_dimension_numbers<[1], [0], [0], [1], [0, 0, 1, 1], [], []>} : vector<2x32xf32>, vector<32x128xf32>, vector<2x128xf32> -> vector<2x128xf32>
    %354 = arith.addf %353, %351 : vector<2x128xf32>
    %355 = arith.negf %354 : vector<2x128xf32>
    %356 = math.exp %355 : vector<2x128xf32>
    %cst_55 = arith.constant 1.000000e+00 : f32
    %357 = vector.broadcast %cst_55 : f32 to vector<2x128xf32>
    %358 = arith.addf %357, %356 : vector<2x128xf32>
    %359 = arith.divf %357, %358 : vector<2x128xf32>
    %360 = vector.extract_strided_slice %359 {offsets = [0, 0], sizes = [2, 32], strides = [1, 1]} : vector<2x128xf32> to vector<2x32xf32>
    %361 = vector.extract_strided_slice %359 {offsets = [0, 32], sizes = [2, 32], strides = [1, 1]} : vector<2x128xf32> to vector<2x32xf32>
    %362 = vector.extract_strided_slice %359 {offsets = [0, 96], sizes = [2, 32], strides = [1, 1]} : vector<2x128xf32> to vector<2x32xf32>
    %363 = vector.extract_strided_slice %354 {offsets = [0, 64], sizes = [2, 32], strides = [1, 1]} : vector<2x128xf32> to vector<2x32xf32>
    %364 = math.tanh %363 : vector<2x32xf32>
    %365 = arith.mulf %361, %341 : vector<2x32xf32>
    %366 = arith.mulf %360, %364 : vector<2x32xf32>
    %367 = arith.addf %365, %366 : vector<2x32xf32>
    %368 = math.tanh %367 : vector<2x32xf32>
    %369 = arith.mulf %362, %368 : vector<2x32xf32>
    %370 = tpu.concatenate %187, %213, %239, %265, %291, %317, %343, %369 in 0 : vector<2x32xf32>, vector<2x32xf32>, vector<2x32xf32>, vector<2x32xf32>, vector<2x32xf32>, vector<2x32xf32>, vector<2x32xf32>, vector<2x32xf32> -> vector<16x32xf32>
    %cst_56 = arith.constant dense<0.000000e+00> : vector<16x8xf32>
    %371 = tpu.matmul %370, %9, %cst_56 {dimension_numbers = #tpu.dot_dimension_numbers<[1], [0], [0], [1], [0, 0, 1, 1], [], []>} : vector<16x32xf32>, vector<32x8xf32>, vector<16x8xf32> -> vector<16x8xf32>
    %372 = vector.broadcast %6 : vector<1x8xf32> to vector<16x8xf32>
    %373 = arith.addf %371, %372 : vector<16x8xf32>
    %374 = vector.extract_strided_slice %373 {offsets = [0, 0], sizes = [2, 8], strides = [1, 1]} : vector<16x8xf32> to vector<2x8xf32>
    %375 = vector.extract_strided_slice %373 {offsets = [2, 0], sizes = [2, 8], strides = [1, 1]} : vector<16x8xf32> to vector<2x8xf32>
    %376 = vector.extract_strided_slice %373 {offsets = [4, 0], sizes = [2, 8], strides = [1, 1]} : vector<16x8xf32> to vector<2x8xf32>
    %377 = vector.extract_strided_slice %373 {offsets = [6, 0], sizes = [2, 8], strides = [1, 1]} : vector<16x8xf32> to vector<2x8xf32>
    %378 = vector.extract_strided_slice %373 {offsets = [8, 0], sizes = [2, 8], strides = [1, 1]} : vector<16x8xf32> to vector<2x8xf32>
    %379 = vector.extract_strided_slice %373 {offsets = [10, 0], sizes = [2, 8], strides = [1, 1]} : vector<16x8xf32> to vector<2x8xf32>
    %380 = vector.extract_strided_slice %373 {offsets = [12, 0], sizes = [2, 8], strides = [1, 1]} : vector<16x8xf32> to vector<2x8xf32>
    %381 = vector.extract_strided_slice %373 {offsets = [14, 0], sizes = [2, 8], strides = [1, 1]} : vector<16x8xf32> to vector<2x8xf32>
    %382 = tpu.concatenate %374, %375, %376, %377, %378, %379, %380, %381 in 1 : vector<2x8xf32>, vector<2x8xf32>, vector<2x8xf32>, vector<2x8xf32>, vector<2x8xf32>, vector<2x8xf32>, vector<2x8xf32>, vector<2x8xf32> -> vector<2x64xf32>
    %c0_57 = arith.constant 0 : index
    %c0_58 = arith.constant 0 : index
    %383 = vector.load %arg4[%c0_57, %c0_58] : memref<2x64xf32, #tpu.memory_space<vmem>>, vector<2x64xf32>
    tpu.vector_store %arg4[%c0_57, %c0_58], %382 {strides = array<i32>} : memref<2x64xf32, #tpu.memory_space<vmem>>, vector<2x64xf32>,
    return
  }
}

</mosaic_0001>

<bundles_post_ra>
// kernel: seq2seq_forward.1
= control target key start
LH: loop header
LB: loop body
LE: loop exit
PB: predicated region body
PF: predicated region fallthrough
CT: control target
= control target key end

     0   :  { %9 = vsyncpa [#allocation4], 0  ;;  %s3138_s0 = inlined_call_operand.vmem [shape: s32[8], index: 0, kind: input, shape index: {}]   ;;  %s3139_s1 = inlined_call_operand.vmem [shape: f32[16,8], index: 1, kind: input, shape index: {}]   ;;  %s3140_s2 = inlined_call_operand.vmem [shape: f32[2,8], index: 2, kind: input, shape index: {}]   ;;  %s3141_s3 = inlined_call_operand.hbm [shape: f32[144,128], index: 3, kind: input, shape index: {}]   ;;  %s3142_s4 = inlined_call_operand.vmem [shape: f32[2,64], index: 4, kind: output, shape index: {}]  }
   0x1   :  { %s17_s17 = sshll.u32 %s3138_s0, 4  ;;  %s18_s17 = int_to_ptr.vmem [resolvable:$true] %s17_s17 }
   0x2   :  { %10 = vsyncpa [#allocation3], 0  ;;  %s2569_s18 = scalar_lea.vmem %s18_s17, 16  ;;  %p2574_p1 = scmp.lt.s32.totalorder %s18_s17, %s18_s17 }
   0x3   :  { %p2570_p0 = scmp.ne.s32.totalorder %s18_s17, %s2569_s18  ;;  %p2575_p2 = scmp.lt.s32.totalorder %s2569_s18, %s2569_s18 }
   0x5   :  { %p2576_p3 = por %p2575_p2, %p2574_p1 }
   0x7   :  { %p2577_p4 = pnand %p2576_p3, %p2570_p0 }
   0x9   :  { %2580 = shalt.err (!%p2577_p4)
}
   0xa   :  { %s2605_s19 = smov [#allocation2]   ;;  %s2606_s20 = smov [#allocation5]  }
   0xb   :  { %20 = dma.vmem_to_smem %s18_s17, 16, %s2605_s19, [#allocation4]  }
   0xc   :  { %s30_s21 = sshll.u32 %s2606_s20, 4  ;;  %s31_s21 = int_to_ptr.vmem [resolvable:$true] %s30_s21 }
   0xd   :  { %s2589_s22 = scalar_lea.vmem %s31_s21, 2304  ;;  %p2594_p6 = scmp.lt.s32.totalorder %s31_s21, %s31_s21 }
   0xe   :  { %p2590_p5 = scmp.ne.s32.totalorder %s31_s21, %s2589_s22  ;;  %p2595_p7 = scmp.lt.s32.totalorder %s2589_s22, %s2589_s22 }
  0x10   :  { %p2596_p8 = por %p2595_p7, %p2594_p6 }
  0x12   :  { %p2597_p9 = pnand %p2596_p8, %p2590_p5 }
  0x14   :  { %2600 = shalt.err (!%p2597_p9)
}
  0x15   :  { %s2607_s0 = smov 128   ;;  %s2608_s23 = smov 8  }
  0x16   :  { %36 = dma.hbm_to_vmem [thread:$0]  %s3141_s3, 2304, %s31_s21, [#allocation3], %s2607_s0, %s2607_s0, %s2608_s23  }
  0x17   :  { %2601 = dma.done.wait [#allocation4], 16  }
  0x18   :  { %2602 = vsyncadd [#allocation4], 4294967280 }
  0x19   :  { %2603 = dma.done.wait [#allocation3], 2304  }
  0x1a   :  { %2604 = vsyncadd [#allocation3], 4294964992 }
  0x1b   :  { %43 = sfence }
  0x1c   :  { %v44_v0 = vld [vmem:[#allocation5] sm:$0xff]  ;;  %vm80_vm0 = vcmask 64512   ;;  %v2609_v3 = vmov 0.0   ;;  %v75_v4 = vld [vmem:[%s3139_s1 + $0x8] sm:$0xff]  ;;  %v2667_v5 = vld [vmem:[#allocation5 + $0x18] sm:$0xff]  ;;  %vm2610_vm1 = vmmov 0  }
  0x1d   :  { %v74_v1 = vld [vmem:[%s3139_s1] sm:$0xff]  ;;  %2222 = vmatprep.subr.mxu0 %v44_v0  ;;  %2227 = vmatprep.subr.mxu1 %v2609_v3  ;;  %v2672_v6 = vld [vmem:[#allocation5 + $0x10] sm:$0xff]  ;;  %v2679_v7 = vld [vmem:[#allocation5 + $0x8] sm:$0xff]  ;;  %s2611_s3 = smov 64   ;;  %s2612_s30 = smov 32   ;;  %vm162_vm2 = vcmask 261120  }
  0x1e   :  { %v2660_v2 = vld [vmem:[#allocation5 + $0x20] sm:$0xff]  ;;  %2223 = vmatpush3.msra.mxu0 %v44_v0  ;;  %2224 = vmatprep.mubr.msk.f32.mxu0 %vm80_vm0, %v74_v1  ;;  %v2089_v8 = vld [vmem:[#allocation5 + $0x28] ss:$0 sm:$0xff]  ;;  %s2115_s11 = sld [smem:[#allocation2 + $0x2]]  ;;  %vm1940_vm6 = vcmask 1041408   ;;  %vm1942_vm7 = vcmask 1043456  }
  0x1f   :  { %2228 = vmatpush3.msra.mxu1 %v2660_v2  ;;  %2225 = vmatmul.mubr.msk.f32.vlgmr.msra.gmra.mxu0 %vm80_vm0, %v75_v4  ;;  %s2118_s13 = sld [smem:[#allocation2 + $0x3]]  ;;  %vm1944_vm9 = vcmask 1045504   ;;  %s2620_s21 = smov 40   ;;  %vm2068_vm13 = vcmask 130048   ;;  %vm2070_vm14 = vcmask 195584   ;;  %vm2073_vm15 = vcmask 326656  }
  0x20   :  { %2229 = vmatprep.subr.mxu1 %v2609_v3  ;;  %2235 = vmatprep.mubr.msk.f32.mxu1 %vm2610_vm1, %v2609_v3  ;;  %s2121_s15 = sld [smem:[#allocation2 + $0x4]]  ;;  %s2621_s22 = smov 16  }
  0x21   :  { %2230 = vmatpush3.msra.mxu1 %v2667_v5  ;;  %2238 = vmatprep.subr.mxu0 %v2609_v3  ;;  %s2124_s17 = sld [smem:[#allocation2 + $0x5]]  ;;  %s2622_s0 = smov 48  }
  0x22   :  { %2231 = vmatprep.subr.mxu1 %v2609_v3  ;;  %2239 = vmatpush3.msra.mxu0 %v2660_v2  ;;  %s2127_s19 = sld [smem:[#allocation2 + $0x6]]  ;;  %s2623_s24 = smov 24  }
  0x23   :  { %2232 = vmatpush3.msra.mxu1 %v2672_v6  ;;  %2240 = vmatprep.subr.mxu0 %v2609_v3  ;;  %s2624_s25 = smov 56  }
  0x24   :  { %2233 = vmatprep.subr.mxu1 %v2609_v3  ;;  %2241 = vmatpush3.msra.mxu0 %v2667_v5  ;;  %p1353_p12 = scmp.gt.s32.totalorder %s2115_s11, 0 }
  0x25   :  { %2234 = vmatpush3.msra.mxu1 %v2679_v7  ;;  %2242 = vmatprep.subr.mxu0 %v2609_v3  ;;  %p1468_p13 = scmp.gt.s32.totalorder %s2118_s13, 0 }
  0x26   :  { %2236 = vmatmul.mubr.f32.vlgmr.msra.gmra.mxu1 %v2609_v3  ;;  %2243 = vmatpush3.msra.mxu0 %v2672_v6  ;;  %s1360_s12 = scalar_select %p1353_p12, 1, 0 }
  0x27   :  { %2244 = vmatprep.subr.mxu0 %v2609_v3  ;;  %2246 = vmatprep.mubr.msk.f32.mxu0 %vm2610_vm1, %v2609_v3  ;;  %s1475_s14 = scalar_select %p1468_p13, 1, 0 }
  0x28   :  { %2245 = vmatpush3.msra.mxu0 %v2679_v7  ;;  %2249 = vmatprep.subr.mxu1 %v2609_v3  ;;  %p1583_p0 = scmp.gt.s32.totalorder %s2121_s15, 0  ;;  %p1698_p1 = scmp.gt.s32.totalorder %s2124_s17, 0 }
  0x29   :  { %2250 = vmatpush3.msra.mxu1 %v2660_v2  ;;  %2257 = vmatprep.mubr.msk.f32.mxu1 %vm2610_vm1, %v2609_v3  ;;  %p1813_p2 = scmp.gt.s32.totalorder %s2127_s19, 0 }
  0x2a   :  { %2251 = vmatprep.subr.mxu1 %v2609_v3  ;;  %2260 = vmatprep.subr.mxu0 %v2609_v3  ;;  %s1590_s16 = scalar_select %p1583_p0, 1, 0 }
  0x2b   :  { %2252 = vmatpush3.msra.mxu1 %v2667_v5  ;;  %s1705_s18 = scalar_select %p1698_p1, 1, 0 }
  0x2c   :  { %2253 = vmatprep.subr.mxu1 %v2609_v3  ;;  %s1820_s20 = scalar_select %p1813_p2, 1, 0 }
  0x2d   :  { %2254 = vmatpush3.msra.mxu1 %v2672_v6 }
  0x2e   :  { %2255 = vmatprep.subr.mxu1 %v2609_v3 }
  0x2f   :  { %2256 = vmatpush3.msra.mxu1 %v2679_v7 }
  0x30   :  { %2271 = vmatprep.subr.mxu1 %v2609_v3 }
  0xdf   :  { %v2226_v9 = vpop.f32.mrf.mxu0 }
  0xe0   :  { %v2706_v10 = vadd.f32 %v2226_v9, %v2089_v8 }
  0xe1   :  { %v153_v11 = vpop.f32.mrf.mxu0 }
  0xe2   :  { %v2708_v12 = vadd.f32 %v2089_v8, %v153_v11 }
  0xe6   :  { %v232_v13 = vpop.f32.mrf.mxu1 }
  0xe7   :  { %v236_v14 = vadd.f32 %v232_v13, %v2708_v12 }
  0xe8   :  { %v2237_v15 = vpop.f32.mrf.mxu1 }
  0xe9   :  { %2441 = vtanh.f32 %v236_v14  ;;  %v2092_v17 = vmul.f32 -1.442695, %v236_v14 }
  0xeb   :  { %2443 = vpow2.f32 %v2092_v17 }
  0xf6   :  { %v2442_v16 = vpop.eup %2441 }
  0xf7   :  { %246 = vrot.lane.b32.xlu0 %v2442_v16, %s2611_s3 }
  0xf8   :  { %v2444_v18 = vpop.eup %2443 }
  0xf9   :  { %v240_v19 = vadd.f32 1.0, %v2444_v18 }
  0xfb   :  { %2445 = vrcp.f32 %v240_v19 }
 0x108   :  { %v2446_v20 = vpop.eup %2445 }
 0x109   :  { %v244_v23 = vmul.f32 0.0, %v2446_v20 }
 0x169   :  { %v247_v21 = vpop.permute.xlu0 %246 }
 0x16a   :  { %v249_v22 = vmul.f32 %v2446_v20, %v247_v21 }
 0x16c   :  { %251 = vrot.lane.b32.xlu0 %v249_v22, %s2612_s30 }
 0x1de   :  { %v252_v24 = vpop.permute.xlu0 %251 }
 0x1df   :  { %v254_v25 = vadd.f32 %v252_v24, %v244_v23 }
 0x1e1   :  { %2447 = vtanh.f32 %v254_v25  ;;  %v348_v41 = vrot.slane %v254_v25, 6 }
 0x1ee   :  { %v2448_v26 = vpop.eup %2447 }
 0x1ef   :  { %257 = vrot.lane.b32.xlu1 %v2448_v26, %s2611_s3 }
 0x261   :  { %v258_v27 = vpop.permute.xlu1 %257 }
 0x262   :  { %v260_v28 = vmul.f32 %v2446_v20, %v258_v27 }
 0x264   :  { %262 = vrot.lane.b32.xlu1 %v260_v28, %s2612_s30 }
 0x2d6   :  { %v263_v29 = vpop.permute.xlu1 %262 }
 0x2d7   :  { %2247 = vmatmul.mubr.msk.f32.vlgmr.msra.gmra.mxu0 %vm162_vm2, %v263_v29 }
 0x2d8   :  { %2261 = vmatpush3.msra.mxu0 %v2660_v2  ;;  %2268 = vmatprep.mubr.msk.f32.mxu0 %vm2610_vm1, %v2609_v3 }
 0x2d9   :  { %2262 = vmatprep.subr.mxu0 %v2609_v3 }
 0x2da   :  { %2263 = vmatpush3.msra.mxu0 %v2667_v5 }
 0x2db   :  { %2264 = vmatprep.subr.mxu0 %v2609_v3 }
 0x2dc   :  { %2265 = vmatpush3.msra.mxu0 %v2672_v6 }
 0x2dd   :  { %2266 = vmatprep.subr.mxu0 %v2609_v3 }
 0x2de   :  { %2267 = vmatpush3.msra.mxu0 %v2679_v7 }
 0x2df   :  { %2282 = vmatprep.subr.mxu0 %v2609_v3 }
 0x397   :  { %v332_v30 = vpop.f32.mrf.mxu0 }
 0x398   :  { %v337_v31 = vrot.slane %v332_v30, 6 }
 0x399   :  { %v2248_v32 = vpop.f32.mrf.mxu0 }
 0x39a   :  { %v339_v33 = vadd.f32 %v337_v31, %v2708_v12 }
 0x39c   :  { %2449 = vtanh.f32 %v339_v33  ;;  %v2094_v35 = vmul.f32 -1.442695, %v339_v33 }
 0x39e   :  { %2451 = vpow2.f32 %v2094_v35 }
 0x3a9   :  { %v2450_v34 = vpop.eup %2449 }
 0x3aa   :  { %352 = vrot.lane.b32.xlu0 %v2450_v34, %s2611_s3 }
 0x3ab   :  { %v2452_v36 = vpop.eup %2451 }
 0x3ac   :  { %v343_v37 = vadd.f32 1.0, %v2452_v36 }
 0x3ae   :  { %2453 = vrcp.f32 %v343_v37 }
 0x3bb   :  { %v2454_v38 = vpop.eup %2453 }
 0x3bc   :  { %v350_v42 = vmul.f32 %v2454_v38, %v348_v41 }
 0x41c   :  { %v353_v39 = vpop.permute.xlu0 %352 }
 0x41d   :  { %v355_v40 = vmul.f32 %v2454_v38, %v353_v39 }
 0x41f   :  { %357 = vrot.lane.b32.xlu1 %v355_v40, %s2612_s30 }
 0x491   :  { %v358_v43 = vpop.permute.xlu1 %357 }
 0x492   :  { %v360_v44 = vadd.f32 %v358_v43, %v350_v42 }
 0x494   :  { %2455 = vtanh.f32 %v360_v44  ;;  %v455_v61 = vrot.slane %v360_v44, 6 }
 0x4a1   :  { %v2456_v45 = vpop.eup %2455 }
 0x4a2   :  { %363 = vrot.lane.b32.xlu0 %v2456_v45, %s2611_s3 }
 0x514   :  { %v364_v46 = vpop.permute.xlu0 %363 }
 0x515   :  { %v366_v47 = vmul.f32 %v2454_v38, %v364_v46 }
 0x517   :  { %v368_v48 = vrot.slane %v366_v47, 2 }
 0x519   :  { %369 = vrot.lane.b32.xlu1 %v368_v48, %s2612_s30 }
 0x58b   :  { %v370_v49 = vpop.permute.xlu1 %369 }
 0x58c   :  { %2258 = vmatmul.mubr.msk.f32.vlgmr.msra.gmra.mxu1 %vm162_vm2, %v370_v49 }
 0x58d   :  { %2272 = vmatpush3.msra.mxu1 %v2660_v2  ;;  %2279 = vmatprep.mubr.msk.f32.mxu1 %vm2610_vm1, %v2609_v3 }
 0x58e   :  { %2273 = vmatprep.subr.mxu1 %v2609_v3 }
 0x58f   :  { %2274 = vmatpush3.msra.mxu1 %v2667_v5 }
 0x590   :  { %2275 = vmatprep.subr.mxu1 %v2609_v3 }
 0x591   :  { %2276 = vmatpush3.msra.mxu1 %v2672_v6 }
 0x592   :  { %2277 = vmatprep.subr.mxu1 %v2609_v3 }
 0x593   :  { %2278 = vmatpush3.msra.mxu1 %v2679_v7 }
 0x594   :  { %2293 = vmatprep.subr.mxu1 %v2609_v3 }
 0x64c   :  { %v439_v50 = vpop.f32.mrf.mxu1 }
 0x64d   :  { %v444_v51 = vrot.slane %v439_v50, 4 }
 0x64e   :  { %v2259_v52 = vpop.f32.mrf.mxu1 }
 0x64f   :  { %v446_v53 = vadd.f32 %v444_v51, %v2708_v12 }
 0x651   :  { %2457 = vtanh.f32 %v446_v53  ;;  %v2096_v55 = vmul.f32 -1.442695, %v446_v53 }
 0x653   :  { %2459 = vpow2.f32 %v2096_v55 }
 0x65e   :  { %v2458_v54 = vpop.eup %2457 }
 0x65f   :  { %459 = vrot.lane.b32.xlu0 %v2458_v54, %s2611_s3 }
 0x660   :  { %v2460_v56 = vpop.eup %2459 }
 0x661   :  { %v450_v57 = vadd.f32 1.0, %v2460_v56 }
 0x663   :  { %2461 = vrcp.f32 %v450_v57 }
 0x670   :  { %v2462_v58 = vpop.eup %2461 }
 0x671   :  { %v457_v62 = vmul.f32 %v2462_v58, %v455_v61 }
 0x6d1   :  { %v460_v59 = vpop.permute.xlu0 %459 }
 0x6d2   :  { %v462_v60 = vmul.f32 %v2462_v58, %v460_v59 }
 0x6d4   :  { %464 = vrot.lane.b32.xlu1 %v462_v60, %s2612_s30 }
 0x746   :  { %v465_v63 = vpop.permute.xlu1 %464 }
 0x747   :  { %v467_v0 = vadd.f32 %v465_v63, %v457_v62 }
 0x749   :  { %2463 = vtanh.f32 %v467_v0  ;;  %v562_v24 = vrot.slane %v467_v0, 6 }
 0x756   :  { %v2464_v1 = vpop.eup %2463 }
 0x757   :  { %470 = vrot.lane.b32.xlu0 %v2464_v1, %s2611_s3 }
 0x7c9   :  { %v471_v4 = vpop.permute.xlu0 %470 }
 0x7ca   :  { %v473_v8 = vmul.f32 %v2462_v58, %v471_v4 }
 0x7cc   :  { %v475_v9 = vrot.slane %v473_v8, 4 }
 0x7ce   :  { %476 = vrot.lane.b32.xlu1 %v475_v9, %s2612_s30 }
 0x840   :  { %v477_v11 = vpop.permute.xlu1 %476 }
 0x841   :  { %2269 = vmatmul.mubr.msk.f32.vlgmr.msra.gmra.mxu0 %vm162_vm2, %v477_v11 }
 0x842   :  { %2283 = vmatpush3.msra.mxu0 %v2660_v2  ;;  %2290 = vmatprep.mubr.msk.f32.mxu0 %vm2610_vm1, %v2609_v3 }
 0x843   :  { %2284 = vmatprep.subr.mxu0 %v2609_v3 }
 0x844   :  { %2285 = vmatpush3.msra.mxu0 %v2667_v5 }
 0x845   :  { %2286 = vmatprep.subr.mxu0 %v2609_v3 }
 0x846   :  { %2287 = vmatpush3.msra.mxu0 %v2672_v6 }
 0x847   :  { %2288 = vmatprep.subr.mxu0 %v2609_v3 }
 0x848   :  { %2289 = vmatpush3.msra.mxu0 %v2679_v7 }
 0x849   :  { %2304 = vmatprep.subr.mxu0 %v2609_v3 }
 0x901   :  { %v546_v13 = vpop.f32.mrf.mxu0 }
 0x902   :  { %v551_v14 = vrot.slane %v546_v13, 2 }
 0x903   :  { %v2270_v15 = vpop.f32.mrf.mxu0 }
 0x904   :  { %v553_v16 = vadd.f32 %v551_v14, %v2708_v12 }
 0x906   :  { %2465 = vtanh.f32 %v553_v16  ;;  %v2098_v18 = vmul.f32 -1.442695, %v553_v16 }
 0x908   :  { %2467 = vpow2.f32 %v2098_v18 }
 0x913   :  { %v2466_v17 = vpop.eup %2465 }
 0x914   :  { %566 = vrot.lane.b32.xlu0 %v2466_v17, %s2611_s3 }
 0x915   :  { %v2468_v19 = vpop.eup %2467 }
 0x916   :  { %v557_v20 = vadd.f32 1.0, %v2468_v19 }
 0x918   :  { %2469 = vrcp.f32 %v557_v20 }
 0x925   :  { %v2470_v21 = vpop.eup %2469 }
 0x926   :  { %v564_v25 = vmul.f32 %v2470_v21, %v562_v24 }
 0x986   :  { %v567_v22 = vpop.permute.xlu0 %566 }
 0x987   :  { %v569_v23 = vmul.f32 %v2470_v21, %v567_v22 }
 0x989   :  { %571 = vrot.lane.b32.xlu1 %v569_v23, %s2612_s30 }
 0x9fb   :  { %v572_v26 = vpop.permute.xlu1 %571 }
 0x9fc   :  { %v574_v27 = vadd.f32 %v572_v26, %v564_v25 }
 0x9fe   :  { %2471 = vtanh.f32 %v574_v27  ;;  %v666_v42 = vrot.slane %v574_v27, 6 }
 0xa0b   :  { %v2472_v12 = vpop.eup %2471 }
 0xa0c   :  { %577 = vrot.lane.b32.xlu0 %v2472_v12, %s2611_s3 }
 0xa7e   :  { %v578_v28 = vpop.permute.xlu0 %577 }
 0xa7f   :  { %v580_v29 = vmul.f32 %v2470_v21, %v578_v28 }
 0xa81   :  { %v582_v30 = vrot.slane %v580_v29, 6 }
 0xa83   :  { %583 = vrot.lane.b32.xlu1 %v582_v30, %s2612_s30 }
 0xaf5   :  { %v584_v31 = vpop.permute.xlu1 %583 }
 0xaf6   :  { %2280 = vmatmul.mubr.msk.f32.vlgmr.msra.gmra.mxu1 %vm162_vm2, %v584_v31 }
 0xaf7   :  { %2294 = vmatpush3.msra.mxu1 %v2660_v2  ;;  %2301 = vmatprep.mubr.msk.f32.mxu1 %vm2610_vm1, %v2609_v3 }
 0xaf8   :  { %2295 = vmatprep.subr.mxu1 %v2609_v3 }
 0xaf9   :  { %2296 = vmatpush3.msra.mxu1 %v2667_v5 }
 0xafa   :  { %2297 = vmatprep.subr.mxu1 %v2609_v3 }
 0xafb   :  { %2298 = vmatpush3.msra.mxu1 %v2672_v6 }
 0xafc   :  { %2299 = vmatprep.subr.mxu1 %v2609_v3 }
 0xafd   :  { %2300 = vmatpush3.msra.mxu1 %v2679_v7 }
 0xafe   :  { %2315 = vmatprep.subr.mxu1 %v2609_v3 }
 0xbb6   :  { %v653_v32 = vpop.f32.mrf.mxu1 }
 0xbb7   :  { %v657_v33 = vadd.f32 %v653_v32, %v2706_v10 }
 0xbb8   :  { %v2281_v34 = vpop.f32.mrf.mxu1 }
 0xbb9   :  { %2473 = vtanh.f32 %v657_v33  ;;  %v2100_v36 = vmul.f32 -1.442695, %v657_v33 }
 0xbbb   :  { %2475 = vpow2.f32 %v2100_v36 }
 0xbc6   :  { %v2474_v35 = vpop.eup %2473 }
 0xbc7   :  { %670 = vrot.lane.b32.xlu0 %v2474_v35, %s2611_s3 }
 0xbc8   :  { %v2476_v37 = vpop.eup %2475 }
 0xbc9   :  { %v661_v38 = vadd.f32 1.0, %v2476_v37 }
 0xbcb   :  { %2477 = vrcp.f32 %v661_v38 }
 0xbd8   :  { %v2478_v39 = vpop.eup %2477 }
 0xbd9   :  { %v668_v43 = vmul.f32 %v2478_v39, %v666_v42 }
 0xc39   :  { %v671_v40 = vpop.permute.xlu0 %670 }
 0xc3a   :  { %v673_v41 = vmul.f32 %v2478_v39, %v671_v40 }
 0xc3c   :  { %675 = vrot.lane.b32.xlu1 %v673_v41, %s2612_s30 }
 0xcae   :  { %v676_v44 = vpop.permute.xlu1 %675 }
 0xcaf   :  { %v678_v45 = vadd.f32 %v676_v44, %v668_v43  ;;  %v2811_v43 = vld [vmem:[#allocation5 + $0x40] sm:$0xff]  ;;  %v2815_v44 = vld [vmem:[#allocation5 + $0x38] sm:$0xff] }
 0xcb1   :  { %2479 = vtanh.f32 %v678_v45 }
 0xcbe   :  { %v2480_v46 = vpop.eup %2479 }
 0xcbf   :  { %681 = vrot.lane.b32.xlu0 %v2480_v46, %s2611_s3 }
 0xd31   :  { %v682_v47 = vpop.permute.xlu0 %681 }
 0xd32   :  { %v684_v48 = vmul.f32 %v2478_v39, %v682_v47  ;;  %v1006_v47 = vld [vmem:[%s3139_s1 + $0xe] sm:$0x3]  ;;  %s1121_s1 = sld [smem:[#allocation2]] }
 0xd34   :  { %686 = vrot.lane.b32.xlu1 %v684_v48, %s2612_s30  ;;  %v2613_v48 = vmov 0  }
 0xd35   :  { %2434 = vset.pattern.permute.xlu0 %v2613_v48 }
 0xd38   :  { %p1122_p10 = scmp.gt.s32.totalorder %s1121_s1, 0 }
 0xd3a   :  { %s1130_s7 = scalar_select %p1122_p10, 1, 0 }
 0xda6   :  { %v687_v49 = vpop.permute.xlu1 %686 }
 0xda7   :  { %2291 = vmatmul.mubr.msk.f32.vlgmr.msra.gmra.mxu0 %vm162_vm2, %v687_v49 }
 0xda8   :  { %2305 = vmatpush3.msra.mxu0 %v2660_v2  ;;  %2312 = vmatprep.mubr.msk.f32.mxu0 %vm2610_vm1, %v2609_v3 }
 0xda9   :  { %2306 = vmatprep.subr.mxu0 %v2609_v3 }
 0xdaa   :  { %2307 = vmatpush3.msra.mxu0 %v2667_v5 }
 0xdab   :  { %2308 = vmatprep.subr.mxu0 %v2609_v3 }
 0xdac   :  { %2309 = vmatpush3.msra.mxu0 %v2672_v6 }
 0xdad   :  { %2310 = vmatprep.subr.mxu0 %v2609_v3 }
 0xdae   :  { %2311 = vmatpush3.msra.mxu0 %v2679_v7  ;;  %v772_v7 = vrot.slane %v678_v45, 6  ;;  %v2819_v45 = vld [vmem:[#allocation5 + $0x30] sm:$0xff] }
 0xdaf   :  { %2326 = vmatprep.subr.mxu0 %v2609_v3 }
 0xe67   :  { %v756_v50 = vpop.f32.mrf.mxu0 }
 0xe68   :  { %v761_v51 = vrot.slane %v756_v50, 6 }
 0xe69   :  { %v2292_v2 = vpop.f32.mrf.mxu0 }
 0xe6a   :  { %v763_v52 = vadd.f32 %v761_v51, %v2706_v10 }
 0xe6c   :  { %2481 = vtanh.f32 %v763_v52  ;;  %v2102_v5 = vmul.f32 -1.442695, %v763_v52  ;;  %v2833_v52 = vld [vmem:[#allocation5 + $0x29] ss:$0 sm:$0xff] }
 0xe6e   :  { %2483 = vpow2.f32 %v2102_v5 }
 0xe79   :  { %v2482_v53 = vpop.eup %2481 }
 0xe7a   :  { %776 = vrot.lane.b32.xlu0 %v2482_v53, %s2611_s3 }
 0xe7b   :  { %v2484_v54 = vpop.eup %2483 }
 0xe7c   :  { %v767_v55 = vadd.f32 1.0, %v2484_v54  ;;  %v2836_v54 = vld [vmem:[#allocation5 + $0x2a] ss:$0 sm:$0xff] }
 0xe7e   :  { %2485 = vrcp.f32 %v767_v55 }
 0xe8b   :  { %v2486_v6 = vpop.eup %2485 }
 0xe8c   :  { %v774_v58 = vmul.f32 %v2486_v6, %v772_v7 }
 0xeec   :  { %v777_v56 = vpop.permute.xlu0 %776 }
 0xeed   :  { %v779_v57 = vmul.f32 %v2486_v6, %v777_v56 }
 0xeef   :  { %781 = vrot.lane.b32.xlu1 %v779_v57, %s2612_s30 }
 0xf61   :  { %v782_v59 = vpop.permute.xlu1 %781 }
 0xf62   :  { %v784_v60 = vadd.f32 %v782_v59, %v774_v58 }
 0xf64   :  { %2487 = vtanh.f32 %v784_v60  ;;  %v879_v20 = vrot.slane %v784_v60, 6 }
 0xf71   :  { %v2488_v61 = vpop.eup %2487 }
 0xf72   :  { %787 = vrot.lane.b32.xlu0 %v2488_v61, %s2611_s3 }
 0xfe4   :  { %v788_v62 = vpop.permute.xlu0 %787 }
 0xfe5   :  { %v790_v63 = vmul.f32 %v2486_v6, %v788_v62 }
 0xfe7   :  { %v792_v0 = vrot.slane %v790_v63, 2 }
 0xfe9   :  { %793 = vrot.lane.b32.xlu1 %v792_v0, %s2612_s30 }
0x105b   :  { %v794_v1 = vpop.permute.xlu1 %793 }
0x105c   :  { %2302 = vmatmul.mubr.msk.f32.vlgmr.msra.gmra.mxu1 %vm162_vm2, %v794_v1 }
0x105d   :  { %2323 = vmatprep.mubr.msk.f32.mxu1 %vm2610_vm1, %v2609_v3 }
0x111c   :  { %v863_v4 = vpop.f32.mrf.mxu1 }
0x111d   :  { %v868_v8 = vrot.slane %v863_v4, 4 }
0x111e   :  { %v2303_v9 = vpop.f32.mrf.mxu1 }
0x111f   :  { %v870_v11 = vadd.f32 %v868_v8, %v2706_v10 }
0x1121   :  { %2489 = vtanh.f32 %v870_v11  ;;  %v2104_v14 = vmul.f32 -1.442695, %v870_v11  ;;  %v2845_v11 = vld [vmem:[%s3140_s2] sm:$0x3]  ;;  %s2112_s2 = sld [smem:[#allocation2 + $0x1]] }
0x1123   :  { %2491 = vpow2.f32 %v2104_v14  ;;  %v1131_v14 = vstv %s1130_s7 }
0x1124   :  { %vm2851_vm3 = vcmp.eq.s32.totalorder %v1131_v14, 1 }
0x1127   :  { %p1238_p11 = scmp.gt.s32.totalorder %s2112_s2, 0 }
0x1129   :  { %s1245_s10 = scalar_select %p1238_p11, 1, 0 }
0x112e   :  { %v2490_v13 = vpop.eup %2489 }
0x112f   :  { %883 = vrot.lane.b32.xlu0 %v2490_v13, %s2611_s3  ;;  %v2847_v13 = vld [vmem:[#allocation5 + $0x68] sm:$0xff] }
0x1130   :  { %v2492_v15 = vpop.eup %2491 }
0x1131   :  { %v874_v16 = vadd.f32 1.0, %v2492_v15  ;;  %v2849_v15 = vld [vmem:[#allocation5 + $0x60] sm:$0xff] }
0x1133   :  { %2493 = vrcp.f32 %v874_v16 }
0x1140   :  { %v2494_v17 = vpop.eup %2493 }
0x1141   :  { %v881_v21 = vmul.f32 %v2494_v17, %v879_v20  ;;  %v2866_v20 = vld [vmem:[#allocation5 + $0x50] sm:$0xff] }
0x11a1   :  { %v884_v18 = vpop.permute.xlu0 %883 }
0x11a2   :  { %v886_v19 = vmul.f32 %v2494_v17, %v884_v18 }
0x11a4   :  { %888 = vrot.lane.b32.xlu1 %v886_v19, %s2612_s30  ;;  %v1136_v19 = vsel %vm2851_vm3, %v2811_v43, %v2849_v15 }
0x1216   :  { %v889_v22 = vpop.permute.xlu1 %888 }
0x1217   :  { %v891_v23 = vadd.f32 %v889_v22, %v881_v21  ;;  %v1134_v22 = vsel %vm2851_vm3, %v2819_v45, %v2866_v20 }
0x1219   :  { %2495 = vtanh.f32 %v891_v23  ;;  %v986_v39 = vrot.slane %v891_v23, 6 }
0x1226   :  { %v2496_v24 = vpop.eup %2495 }
0x1227   :  { %894 = vrot.lane.b32.xlu0 %v2496_v24, %s2611_s3 }
0x1299   :  { %v895_v25 = vpop.permute.xlu0 %894 }
0x129a   :  { %v897_v26 = vmul.f32 %v2494_v17, %v895_v25  ;;  %v2855_v17 = vld [vmem:[#allocation5 + $0x58] sm:$0xff] }
0x129b   :  { %v1135_v21 = vsel %vm2851_vm3, %v2815_v44, %v2855_v17 }
0x129c   :  { %v899_v27 = vrot.slane %v897_v26, 4 }
0x129e   :  { %900 = vrot.lane.b32.xlu1 %v899_v27, %s2612_s30 }
0x1310   :  { %v901_v12 = vpop.permute.xlu1 %900 }
0x1311   :  { %2313 = vmatmul.mubr.msk.f32.vlgmr.msra.gmra.mxu0 %vm162_vm2, %v901_v12 }
0x1312   :  { %2334 = vmatprep.mubr.msk.f32.mxu0 %vm2610_vm1, %v2609_v3 }
0x13d1   :  { %v970_v28 = vpop.f32.mrf.mxu0 }
0x13d2   :  { %v975_v29 = vrot.slane %v970_v28, 2  ;;  %v2889_v28 = vld [vmem:[#allocation5 + $0x2b] ss:$0 sm:$0xff] }
0x13d3   :  { %v2314_v30 = vpop.f32.mrf.mxu0 }
0x13d4   :  { %v977_v31 = vadd.f32 %v975_v29, %v2706_v10  ;;  %v2809_v10 = vld [vmem:[#allocation5 + $0x48] sm:$0xff] }
0x13d5   :  { %2316 = vmatpush3.msra.mxu1 %v2809_v10  ;;  %v1137_v18 = vsel %vm2851_vm3, %v2809_v10, %v2847_v13 }
0x13d6   :  { %2497 = vtanh.f32 %v977_v31  ;;  %v2106_v33 = vmul.f32 -1.442695, %v977_v31  ;;  %2317 = vmatprep.subr.mxu1 %v2609_v3  ;;  %2327 = vmatpush3.msra.mxu0 %v1137_v18 }
0x13d7   :  { %2318 = vmatpush3.msra.mxu1 %v2811_v43  ;;  %2328 = vmatprep.subr.mxu0 %v2609_v3 }
0x13d8   :  { %2499 = vpow2.f32 %v2106_v33  ;;  %2319 = vmatprep.subr.mxu1 %v2609_v3  ;;  %2329 = vmatpush3.msra.mxu0 %v1136_v19 }
0x13d9   :  { %2320 = vmatpush3.msra.mxu1 %v2815_v44  ;;  %2330 = vmatprep.subr.mxu0 %v2609_v3 }
0x13da   :  { %2321 = vmatprep.subr.mxu1 %v2609_v3  ;;  %2331 = vmatpush3.msra.mxu0 %v1135_v21  ;;  %v1361_v21 = vstv %s1360_s12 }
0x13db   :  { %2322 = vmatpush3.msra.mxu1 %v2819_v45  ;;  %2332 = vmatprep.subr.mxu0 %v2609_v3  ;;  %vm2934_vm5 = vcmp.eq.s32.totalorder %v1361_v21, 1 }
0x13dc   :  { %2337 = vmatprep.subr.mxu1 %v2609_v3  ;;  %2333 = vmatpush3.msra.mxu0 %v1134_v22 }
0x13dd   :  { %2348 = vmatprep.subr.mxu0 %v2609_v3 }
0x13e3   :  { %v2498_v32 = vpop.eup %2497 }
0x13e4   :  { %990 = vrot.lane.b32.xlu0 %v2498_v32, %s2611_s3 }
0x13e5   :  { %v2500_v34 = vpop.eup %2499 }
0x13e6   :  { %v981_v35 = vadd.f32 1.0, %v2500_v34 }
0x13e8   :  { %2501 = vrcp.f32 %v981_v35 }
0x13f5   :  { %v2502_v36 = vpop.eup %2501 }
0x13f6   :  { %v988_v40 = vmul.f32 %v2502_v36, %v986_v39 }
0x1456   :  { %v991_v37 = vpop.permute.xlu0 %990 }
0x1457   :  { %v993_v38 = vmul.f32 %v2502_v36, %v991_v37 }
0x1459   :  { %995 = vrot.lane.b32.xlu1 %v993_v38, %s2612_s30 }
0x14cb   :  { %v996_v41 = vpop.permute.xlu1 %995 }
0x14cc   :  { %v998_v42 = vadd.f32 %v996_v41, %v988_v40 }
0x14ce   :  { %2503 = vtanh.f32 %v998_v42  ;;  %v1102_v0 = vrot.slane %v998_v42, 6 }
0x14db   :  { %v2504_v46 = vpop.eup %2503 }
0x14dc   :  { %1001 = vrot.lane.b32.xlu0 %v2504_v46, %s2611_s3 }
0x14e0   :  { %1009 = vperm.xlu0 %2434, %v1006_v47   ;;  %v1246_v47 = vstv %s1245_s10 }
0x14e1   :  { %vm2897_vm4 = vcmp.eq.s32.totalorder %v1246_v47, 1 }
0x154e   :  { %v1002_v49 = vpop.permute.xlu0 %1001 }
0x154f   :  { %v1004_v50 = vmul.f32 %v2502_v36, %v1002_v49  ;;  %v1252_v49 = vsel %vm2897_vm4, %v2809_v10, %v2847_v13 }
0x1551   :  { %v1019_v51 = vrot.slane %v1004_v50, 6  ;;  %v1251_v50 = vsel %vm2897_vm4, %v2811_v43, %v2849_v15 }
0x1553   :  { %1020 = vrot.lane.b32.xlu1 %v1019_v51, %s2612_s30  ;;  %v1250_v51 = vsel %vm2897_vm4, %v2815_v44, %v2855_v17 }
0x155b   :  { %v1010_v53 = vpop.permute.xlu0 %1009 }
0x155c   :  { %v1016_v5 = vmul.f32 %v2833_v52, %v1010_v53  ;;  %v2614_v53 = vmov 1  }
0x155d   :  { %2435 = vset.pattern.permute.xlu1 %v2614_v53 }
0x155e   :  { %v1017_v55 = vadd.f32 %v2836_v54, %v1016_v5 }
0x15c5   :  { %v1021_v2 = vpop.permute.xlu1 %1020 }
0x15c6   :  { %2324 = vmatmul.mubr.msk.f32.vlgmr.msra.gmra.mxu1 %vm162_vm2, %v1021_v2  ;;  %v1249_v2 = vsel %vm2897_vm4, %v2819_v45, %v2866_v20 }
0x15c7   :  { %2345 = vmatprep.mubr.msk.f32.mxu1 %vm2610_vm1, %v2609_v3  ;;  %2338 = vmatpush3.msra.mxu1 %v1252_v49 }
0x15c8   :  { %2339 = vmatprep.subr.mxu1 %v2609_v3 }
0x15c9   :  { %2340 = vmatpush3.msra.mxu1 %v1251_v50 }
0x15ca   :  { %2341 = vmatprep.subr.mxu1 %v2609_v3 }
0x15cb   :  { %2342 = vmatpush3.msra.mxu1 %v1250_v51 }
0x15cc   :  { %2343 = vmatprep.subr.mxu1 %v2609_v3 }
0x15cd   :  { %2344 = vmatpush3.msra.mxu1 %v1249_v2 }
0x15ce   :  { %2359 = vmatprep.subr.mxu1 %v2609_v3 }
0x1686   :  { %v1090_v6 = vpop.f32.mrf.mxu1 }
0x1687   :  { %v1091_v56 = vadd.f32 %v1090_v6, %v1017_v55 }
0x1688   :  { %v2325_v57 = vpop.f32.mrf.mxu1 }
0x1689   :  { %2505 = vtanh.f32 %v1091_v56  ;;  %v2109_v58 = vmul.f32 -1.442695, %v1091_v56 }
0x168b   :  { %2507 = vpow2.f32 %v2109_v58 }
0x1696   :  { %v2506_v7 = vpop.eup %2505 }
0x1697   :  { %1106 = vrot.lane.b32.xlu1 %v2506_v7, %s2611_s3 }
0x1698   :  { %v2508_v59 = vpop.eup %2507 }
0x1699   :  { %v1097_v60 = vadd.f32 1.0, %v2508_v59 }
0x169b   :  { %2509 = vrcp.f32 %v1097_v60 }
0x16a8   :  { %v2510_v61 = vpop.eup %2509 }
0x16a9   :  { %v1104_v1 = vmul.f32 %v2510_v61, %v1102_v0 }
0x1709   :  { %v1107_v62 = vpop.permute.xlu1 %1106 }
0x170a   :  { %v1109_v63 = vmul.f32 %v2510_v61, %v1107_v62 }
0x170c   :  { %1111 = vrot.lane.b32.xlu1 %v1109_v63, %s2612_s30 }
0x177e   :  { %v1112_v4 = vpop.permute.xlu1 %1111 }
0x177f   :  { %v1114_v8 = vadd.f32 %v1112_v4, %v1104_v1 }
0x1781   :  { %2511 = vtanh.f32 %v1114_v8 }
0x178e   :  { %v2512_v9 = vpop.eup %2511 }
0x178f   :  { %1117 = vrot.lane.b32.xlu0 %v2512_v9, %s2611_s3 }
0x1793   :  { %1125 = vperm.xlu0 %2434, %v2845_v11  }
0x1801   :  { %v1118_v23 = vpop.permute.xlu0 %1117 }
0x1802   :  { %v2880_v24 = vmul.f32 %v2510_v61, %v1118_v23  ;;  %v1367_v23 = vsel %vm2934_vm5, %v2809_v10, %v2847_v13 }
0x1804   :  { %1139 = vrot.lane.b32.xlu1 %v2880_v24, %s2612_s30 }
0x180e   :  { %v1126_v26 = vpop.permute.xlu0 %1125 }
0x180f   :  { %v1128_v27 = vmul.f32 %v2833_v52, %v1126_v26  ;;  %v1365_v26 = vsel %vm2934_vm5, %v2815_v44, %v2855_v17 }
0x1811   :  { %v1129_v12 = vadd.f32 %v2836_v54, %v1128_v27  ;;  %v1364_v27 = vsel %vm2934_vm5, %v2819_v45, %v2866_v20 }
0x1813   :  { %v1133_v29 = vsel %vm2851_vm3, %v1129_v12, %v2889_v28  ;;  %v2615_v12 = vmov 2   ;;  %vm2077_vm3 = vcmask 457728  }
0x1814   :  { %2436 = vset.pattern.permute.xlu0 %v2615_v12 }
0x1876   :  { %v1140_v25 = vpop.permute.xlu1 %1139 }
0x1877   :  { %2335 = vmatmul.mubr.msk.f32.vlgmr.msra.gmra.mxu0 %vm162_vm2, %v1140_v25  ;;  %v1366_v25 = vsel %vm2934_vm5, %v2811_v43, %v2849_v15 }
0x1878   :  { %2356 = vmatprep.mubr.msk.f32.mxu0 %vm2610_vm1, %v2609_v3  ;;  %2349 = vmatpush3.msra.mxu0 %v1367_v23 }
0x1879   :  { %2350 = vmatprep.subr.mxu0 %v2609_v3 }
0x187a   :  { %2351 = vmatpush3.msra.mxu0 %v1366_v25 }
0x187b   :  { %2352 = vmatprep.subr.mxu0 %v2609_v3 }
0x187c   :  { %2353 = vmatpush3.msra.mxu0 %v1365_v26 }
0x187d   :  { %2354 = vmatprep.subr.mxu0 %v2609_v3 }
0x187e   :  { %2355 = vmatpush3.msra.mxu0 %v1364_v27 }
0x187f   :  { %2370 = vmatprep.subr.mxu0 %v2609_v3 }
0x1937   :  { %v1209_v30 = vpop.f32.mrf.mxu0 }
0x1938   :  { %v1210_v31 = vadd.f32 %v1209_v30, %v1133_v29 }
0x1939   :  { %v2336_v32 = vpop.f32.mrf.mxu0 }
0x193a   :  { %2513 = vtanh.f32 %v1210_v31  ;;  %v2111_v34 = vmul.f32 -1.442695, %v1210_v31 }
0x193c   :  { %2515 = vpow2.f32 %v2111_v34 }
0x1947   :  { %v2514_v33 = vpop.eup %2513 }
0x1948   :  { %1222 = vrot.lane.b32.xlu1 %v2514_v33, %s2611_s3 }
0x1949   :  { %v2516_v35 = vpop.eup %2515 }
0x194a   :  { %v1216_v36 = vadd.f32 1.0, %v2516_v35 }
0x194c   :  { %2517 = vrcp.f32 %v1216_v36 }
0x1959   :  { %v2518_v37 = vpop.eup %2517 }
0x195a   :  { %v1220_v40 = vmul.f32 %v2518_v37, %v1114_v8 }
0x19ba   :  { %v1223_v38 = vpop.permute.xlu1 %1222 }
0x19bb   :  { %v1225_v39 = vmul.f32 %v2518_v37, %v1223_v38 }
0x19bd   :  { %1227 = vrot.lane.b32.xlu0 %v1225_v39, %s2612_s30 }
0x1a2f   :  { %v1228_v41 = vpop.permute.xlu0 %1227 }
0x1a30   :  { %v1230_v42 = vadd.f32 %v1228_v41, %v1220_v40 }
0x1a32   :  { %2519 = vtanh.f32 %v1230_v42 }
0x1a3f   :  { %v2520_v46 = vpop.eup %2519 }
0x1a40   :  { %1233 = vrot.lane.b32.xlu1 %v2520_v46, %s2611_s3 }
0x1a44   :  { %1240 = vperm.xlu1 %2435, %v2845_v11  }
0x1ab2   :  { %v1234_v5 = vpop.permute.xlu1 %1233 }
0x1ab3   :  { %v1236_v55 = vmul.f32 %v2518_v37, %v1234_v5 }
0x1ab5   :  { %1254 = vrot.lane.b32.xlu0 %v1236_v55, %s2612_s30  ;;  %v1927_v29 = vrot.slane %v1236_v55, 6 }
0x1ab7   :  { %v1941_v33 = vsel %vm1940_vm6, %v2880_v24, %v1927_v29 }
0x1abf   :  { %v1241_v56 = vpop.permute.xlu1 %1240 }
0x1ac0   :  { %v1243_v57 = vmul.f32 %v2833_v52, %v1241_v56 }
0x1ac2   :  { %v1244_v7 = vadd.f32 %v2836_v54, %v1243_v57 }
0x1ac4   :  { %v1248_v58 = vsel %vm2897_vm4, %v1244_v7, %v2889_v28  ;;  %vm2079_vm4 = vcmask 517120  }
0x1b27   :  { %v1255_v6 = vpop.permute.xlu0 %1254 }
0x1b28   :  { %2346 = vmatmul.mubr.msk.f32.vlgmr.msra.gmra.mxu1 %vm162_vm2, %v1255_v6  ;;  %v1476_v6 = vstv %s1475_s14 }
0x1b29   :  { %2367 = vmatprep.mubr.msk.f32.mxu1 %vm2610_vm1, %v2609_v3  ;;  %vm2974_vm8 = vcmp.eq.s32.totalorder %v1476_v6, 1 }
0x1b2a   :  { %v1482_v57 = vsel %vm2974_vm8, %v2809_v10, %v2847_v13  ;;  %v1481_v7 = vsel %vm2974_vm8, %v2811_v43, %v2849_v15 }
0x1b2b   :  { %2360 = vmatpush3.msra.mxu1 %v1482_v57 }
0x1b2c   :  { %2361 = vmatprep.subr.mxu1 %v2609_v3 }
0x1b2d   :  { %2362 = vmatpush3.msra.mxu1 %v1481_v7 }
0x1b2e   :  { %2363 = vmatprep.subr.mxu1 %v2609_v3 }
0x1be8   :  { %v1324_v59 = vpop.f32.mrf.mxu1 }
0x1be9   :  { %v1325_v60 = vadd.f32 %v1324_v59, %v1248_v58  ;;  %v1480_v58 = vsel %vm2974_vm8, %v2815_v44, %v2855_v17  ;;  %v1479_v59 = vsel %vm2974_vm8, %v2819_v45, %v2866_v20 }
0x1bea   :  { %v2347_v61 = vpop.f32.mrf.mxu1  ;;  %2364 = vmatpush3.msra.mxu1 %v1480_v58 }
0x1beb   :  { %2521 = vtanh.f32 %v1325_v60  ;;  %v2114_v63 = vmul.f32 -1.442695, %v1325_v60  ;;  %2365 = vmatprep.subr.mxu1 %v2609_v3  ;;  %v2616_v60 = vmov 3  }
0x1bec   :  { %2366 = vmatpush3.msra.mxu1 %v1479_v59 }
0x1bed   :  { %2523 = vpow2.f32 %v2114_v63  ;;  %2381 = vmatprep.subr.mxu1 %v2609_v3 }
0x1bf8   :  { %v2522_v62 = vpop.eup %2521 }
0x1bf9   :  { %1337 = vrot.lane.b32.xlu0 %v2522_v62, %s2611_s3 }
0x1bfa   :  { %v2524_v0 = vpop.eup %2523 }
0x1bfb   :  { %v1331_v1 = vadd.f32 1.0, %v2524_v0 }
0x1bfd   :  { %2525 = vrcp.f32 %v1331_v1 }
0x1c0a   :  { %v2526_v4 = vpop.eup %2525 }
0x1c0b   :  { %v1335_v14 = vmul.f32 %v2526_v4, %v1230_v42 }
0x1c6b   :  { %v1338_v8 = vpop.permute.xlu0 %1337 }
0x1c6c   :  { %v1340_v9 = vmul.f32 %v2526_v4, %v1338_v8 }
0x1c6e   :  { %1342 = vrot.lane.b32.xlu1 %v1340_v9, %s2612_s30 }
0x1ce0   :  { %v1343_v16 = vpop.permute.xlu1 %1342 }
0x1ce1   :  { %v1345_v18 = vadd.f32 %v1343_v16, %v1335_v14 }
0x1ce3   :  { %2527 = vtanh.f32 %v1345_v18 }
0x1cf0   :  { %v2528_v19 = vpop.eup %2527 }
0x1cf1   :  { %1348 = vrot.lane.b32.xlu0 %v2528_v19, %s2611_s3 }
0x1cf5   :  { %1355 = vperm.xlu0 %2436, %v2845_v11  }
0x1cf9   :  { %2437 = vset.pattern.permute.xlu0 %v2616_v60 }
0x1d63   :  { %v1349_v30 = vpop.permute.xlu0 %1348 }
0x1d64   :  { %v1351_v31 = vmul.f32 %v2526_v4, %v1349_v30 }
0x1d66   :  { %v1929_v32 = vrot.slane %v1351_v31, 4  ;;  %1369 = vrot.lane.b32.xlu1 %v1351_v31, %s2612_s30 }
0x1d68   :  { %v1943_v34 = vsel %vm1942_vm7, %v1941_v33, %v1929_v32  ;;  %v1591_v33 = vstv %s1590_s16 }
0x1d69   :  { %vm3014_vm10 = vcmp.eq.s32.totalorder %v1591_v33, 1 }
0x1d70   :  { %v1356_v36 = vpop.permute.xlu0 %1355 }
0x1d71   :  { %v1358_v37 = vmul.f32 %v2833_v52, %v1356_v36  ;;  %v1596_v36 = vsel %vm3014_vm10, %v2811_v43, %v2849_v15 }
0x1d73   :  { %v1359_v38 = vadd.f32 %v2836_v54, %v1358_v37  ;;  %v1595_v37 = vsel %vm3014_vm10, %v2815_v44, %v2855_v17 }
0x1d75   :  { %v1363_v39 = vsel %vm2934_vm5, %v1359_v38, %v2889_v28  ;;  %v1594_v38 = vsel %vm3014_vm10, %v2819_v45, %v2866_v20 }
0x1dd8   :  { %v1370_v35 = vpop.permute.xlu1 %1369 }
0x1dd9   :  { %2357 = vmatmul.mubr.msk.f32.vlgmr.msra.gmra.mxu0 %vm162_vm2, %v1370_v35  ;;  %v1597_v35 = vsel %vm3014_vm10, %v2809_v10, %v2847_v13 }
0x1dda   :  { %2378 = vmatprep.mubr.msk.f32.mxu0 %vm2610_vm1, %v2609_v3  ;;  %2371 = vmatpush3.msra.mxu0 %v1597_v35 }
0x1ddb   :  { %2372 = vmatprep.subr.mxu0 %v2609_v3 }
0x1ddc   :  { %2373 = vmatpush3.msra.mxu0 %v1596_v36 }
0x1ddd   :  { %2374 = vmatprep.subr.mxu0 %v2609_v3 }
0x1dde   :  { %2375 = vmatpush3.msra.mxu0 %v1595_v37 }
0x1ddf   :  { %2376 = vmatprep.subr.mxu0 %v2609_v3 }
0x1de0   :  { %2377 = vmatpush3.msra.mxu0 %v1594_v38 }
0x1de1   :  { %2392 = vmatprep.subr.mxu0 %v2609_v3 }
0x1e99   :  { %v1439_v40 = vpop.f32.mrf.mxu0 }
0x1e9a   :  { %v1440_v41 = vadd.f32 %v1439_v40, %v1363_v39  ;;  %v2617_v39 = vmov 4  }
0x1e9b   :  { %v2358_v24 = vpop.f32.mrf.mxu0 }
0x1e9c   :  { %2529 = vtanh.f32 %v1440_v41  ;;  %v2117_v46 = vmul.f32 -1.442695, %v1440_v41 }
0x1e9e   :  { %2531 = vpow2.f32 %v2117_v46 }
0x1ea9   :  { %v2530_v42 = vpop.eup %2529 }
0x1eaa   :  { %1452 = vrot.lane.b32.xlu1 %v2530_v42, %s2611_s3 }
0x1eab   :  { %v2532_v47 = vpop.eup %2531 }
0x1eac   :  { %v1446_v48 = vadd.f32 1.0, %v2532_v47 }
0x1eae   :  { %2533 = vrcp.f32 %v1446_v48 }
0x1ebb   :  { %v2534_v49 = vpop.eup %2533 }
0x1ebc   :  { %v1450_v2 = vmul.f32 %v2534_v49, %v1345_v18 }
0x1f1c   :  { %v1453_v50 = vpop.permute.xlu1 %1452 }
0x1f1d   :  { %v1455_v51 = vmul.f32 %v2534_v49, %v1453_v50 }
0x1f1f   :  { %1457 = vrot.lane.b32.xlu1 %v1455_v51, %s2612_s30 }
0x1f91   :  { %v1458_v53 = vpop.permute.xlu1 %1457 }
0x1f92   :  { %v1460_v5 = vadd.f32 %v1458_v53, %v1450_v2 }
0x1f94   :  { %2535 = vtanh.f32 %v1460_v5 }
0x1fa1   :  { %v2536_v55 = vpop.eup %2535 }
0x1fa2   :  { %1463 = vrot.lane.b32.xlu0 %v2536_v55, %s2611_s3 }
0x1fa6   :  { %1470 = vperm.xlu0 %2437, %v2845_v11  }
0x1faa   :  { %2438 = vset.pattern.permute.xlu0 %v2617_v39  ;;  %v1821_v39 = vstv %s1820_s20 }
0x1fab   :  { %vm3088_vm12 = vcmp.eq.s32.totalorder %v1821_v39, 1 }
0x2014   :  { %v1464_v61 = vpop.permute.xlu0 %1463 }
0x2015   :  { %v1466_v62 = vmul.f32 %v2534_v49, %v1464_v61  ;;  %v1706_v61 = vstv %s1705_s18 }
0x2016   :  { %vm3054_vm11 = vcmp.eq.s32.totalorder %v1706_v61, 1  ;;  %v62_v61 = vld [vmem:[#allocation5 + $0x70] sm:$0xff] }
0x2017   :  { %v1931_v63 = vrot.slane %v1466_v62, 2  ;;  %1484 = vrot.lane.b32.xlu1 %v1466_v62, %s2612_s30 }
0x2019   :  { %v3001_v0 = vsel %vm1944_vm9, %v1943_v34, %v1931_v63  ;;  %v1712_v63 = vsel %vm3054_vm11, %v2809_v10, %v2847_v13 }
0x2021   :  { %v1471_v4 = vpop.permute.xlu0 %1470 }
0x2022   :  { %v1473_v8 = vmul.f32 %v2833_v52, %v1471_v4  ;;  %v1710_v4 = vsel %vm3054_vm11, %v2815_v44, %v2855_v17 }
0x2024   :  { %v1474_v9 = vadd.f32 %v2836_v54, %v1473_v8  ;;  %v1709_v8 = vsel %vm3054_vm11, %v2819_v45, %v2866_v20 }
0x2026   :  { %v1478_v14 = vsel %vm2974_vm8, %v1474_v9, %v2889_v28  ;;  %v2618_v9 = vmov 5  }
0x2089   :  { %v1485_v1 = vpop.permute.xlu1 %1484 }
0x208a   :  { %2368 = vmatmul.mubr.msk.f32.vlgmr.msra.gmra.mxu1 %vm162_vm2, %v1485_v1  ;;  %v1711_v1 = vsel %vm3054_vm11, %v2811_v43, %v2849_v15 }
0x208b   :  { %2389 = vmatprep.mubr.msk.f32.mxu1 %vm2610_vm1, %v2609_v3  ;;  %2382 = vmatpush3.msra.mxu1 %v1712_v63 }
0x208c   :  { %2383 = vmatprep.subr.mxu1 %v2609_v3 }
0x208d   :  { %2384 = vmatpush3.msra.mxu1 %v1711_v1 }
0x208e   :  { %2385 = vmatprep.subr.mxu1 %v2609_v3 }
0x208f   :  { %2386 = vmatpush3.msra.mxu1 %v1710_v4 }
0x2090   :  { %2387 = vmatprep.subr.mxu1 %v2609_v3 }
0x2091   :  { %2388 = vmatpush3.msra.mxu1 %v1709_v8 }
0x214a   :  { %v1554_v16 = vpop.f32.mrf.mxu1 }
0x214b   :  { %v1555_v18 = vadd.f32 %v1554_v16, %v1478_v14 }
0x214c   :  { %v2369_v19 = vpop.f32.mrf.mxu1 }
0x214d   :  { %2537 = vtanh.f32 %v1555_v18  ;;  %v2120_v22 = vmul.f32 -1.442695, %v1555_v18 }
0x214f   :  { %2539 = vpow2.f32 %v2120_v22 }
0x215a   :  { %v2538_v21 = vpop.eup %2537 }
0x215b   :  { %1567 = vrot.lane.b32.xlu1 %v2538_v21, %s2611_s3 }
0x215c   :  { %v2540_v23 = vpop.eup %2539 }
0x215d   :  { %v1561_v25 = vadd.f32 1.0, %v2540_v23 }
0x215f   :  { %2541 = vrcp.f32 %v1561_v25 }
0x216c   :  { %v2542_v26 = vpop.eup %2541 }
0x216d   :  { %v1565_v29 = vmul.f32 %v2542_v26, %v1460_v5 }
0x21cd   :  { %v1568_v27 = vpop.permute.xlu1 %1567 }
0x21ce   :  { %v1570_v12 = vmul.f32 %v2542_v26, %v1568_v27 }
0x21d0   :  { %1572 = vrot.lane.b32.xlu1 %v1570_v12, %s2612_s30 }
0x2242   :  { %v1573_v30 = vpop.permute.xlu1 %1572 }
0x2243   :  { %v1575_v31 = vadd.f32 %v1573_v30, %v1565_v29 }
0x2245   :  { %2543 = vtanh.f32 %v1575_v31 }
0x2252   :  { %v2544_v32 = vpop.eup %2543 }
0x2253   :  { %1578 = vrot.lane.b32.xlu0 %v2544_v32, %s2611_s3 }
0x2257   :  { %1585 = vperm.xlu0 %2438, %v2845_v11  }
0x225b   :  { %2439 = vset.pattern.permute.xlu0 %v2618_v9  ;;  %v2130_v9 = vld [vmem:[#allocation5 + $0x2c] ss:$0 sm:$0xff] }
0x22c5   :  { %v1579_v40 = vpop.permute.xlu0 %1578 }
0x22c6   :  { %v3039_v41 = vmul.f32 %v2542_v26, %v1579_v40 }
0x22c8   :  { %1599 = vrot.lane.b32.xlu1 %v3039_v41, %s2612_s30 }
0x22d2   :  { %v1586_v42 = vpop.permute.xlu0 %1585 }
0x22d3   :  { %v1588_v46 = vmul.f32 %v2833_v52, %v1586_v42  ;;  %v1826_v42 = vsel %vm3088_vm12, %v2811_v43, %v2849_v15  ;;  %v2619_v43 = vmov 6  }
0x22d5   :  { %v1589_v47 = vadd.f32 %v2836_v54, %v1588_v46  ;;  %v1825_v46 = vsel %vm3088_vm12, %v2815_v44, %v2855_v17 }
0x22d7   :  { %v1593_v48 = vsel %vm3014_vm10, %v1589_v47, %v2889_v28 }
0x233a   :  { %v1600_v24 = vpop.permute.xlu1 %1599 }
0x233b   :  { %2379 = vmatmul.mubr.msk.f32.vlgmr.msra.gmra.mxu0 %vm162_vm2, %v1600_v24  ;;  %v1827_v24 = vsel %vm3088_vm12, %v2809_v10, %v2847_v13  ;;  %v1824_v10 = vsel %vm3088_vm12, %v2819_v45, %v2866_v20 }
0x233c   :  { %2400 = vmatprep.mubr.msk.f32.mxu0 %vm2610_vm1, %v2609_v3  ;;  %2393 = vmatpush3.msra.mxu0 %v1827_v24  ;;  %vm2075_vm1 = vcmask 392192  }
0x233d   :  { %2394 = vmatprep.subr.mxu0 %v2609_v3 }
0x233e   :  { %2395 = vmatpush3.msra.mxu0 %v1826_v42 }
0x233f   :  { %2396 = vmatprep.subr.mxu0 %v2609_v3 }
0x2340   :  { %2397 = vmatpush3.msra.mxu0 %v1825_v46 }
0x2341   :  { %2398 = vmatprep.subr.mxu0 %v2609_v3 }
0x2342   :  { %2399 = vmatpush3.msra.mxu0 %v1824_v10 }
0x23fb   :  { %v1669_v49 = vpop.f32.mrf.mxu0 }
0x23fc   :  { %v1670_v50 = vadd.f32 %v1669_v49, %v1593_v48 }
0x23fd   :  { %v2380_v51 = vpop.f32.mrf.mxu0 }
0x23fe   :  { %2545 = vtanh.f32 %v1670_v50  ;;  %v2123_v53 = vmul.f32 -1.442695, %v1670_v50 }
0x2400   :  { %2547 = vpow2.f32 %v2123_v53 }
0x240b   :  { %v2546_v2 = vpop.eup %2545 }
0x240c   :  { %1682 = vrot.lane.b32.xlu1 %v2546_v2, %s2611_s3 }
0x240d   :  { %v2548_v5 = vpop.eup %2547 }
0x240e   :  { %v1676_v55 = vadd.f32 1.0, %v2548_v5 }
0x2410   :  { %2549 = vrcp.f32 %v1676_v55 }
0x241d   :  { %v2550_v6 = vpop.eup %2549 }
0x241e   :  { %v1680_v7 = vmul.f32 %v2550_v6, %v1575_v31 }
0x247e   :  { %v1683_v56 = vpop.permute.xlu1 %1682 }
0x247f   :  { %v1685_v57 = vmul.f32 %v2550_v6, %v1683_v56 }
0x2481   :  { %1687 = vrot.lane.b32.xlu1 %v1685_v57, %s2612_s30 }
0x24f3   :  { %v1688_v58 = vpop.permute.xlu1 %1687 }
0x24f4   :  { %v1690_v59 = vadd.f32 %v1688_v58, %v1680_v7  ;;  %v65_v58 = vld [vmem:[#allocation5 + $0x88] sm:$0xff] }
0x24f5   :  { %2403 = vmatprep.subr.mxu1 %v65_v58 }
0x24f6   :  { %2551 = vtanh.f32 %v1690_v59 }
0x2503   :  { %v2552_v60 = vpop.eup %2551 }
0x2504   :  { %1693 = vrot.lane.b32.xlu0 %v2552_v60, %s2611_s3  ;;  %v63_v60 = vld [vmem:[#allocation5 + $0x78] sm:$0xff] }
0x2508   :  { %1700 = vperm.xlu0 %2439, %v2845_v11  }
0x250c   :  { %2440 = vset.pattern.permute.xlu0 %v2619_v43 }
0x2576   :  { %v1694_v14 = vpop.permute.xlu0 %1693 }
0x2577   :  { %v1696_v16 = vmul.f32 %v2550_v6, %v1694_v14 }
0x2579   :  { %1714 = vrot.lane.b32.xlu1 %v1696_v16, %s2612_s30  ;;  %v1933_v13 = vrot.slane %v1696_v16, 6 }
0x257b   :  { %v1946_v17 = vsel %vm1940_vm6, %v3039_v41, %v1933_v13 }
0x2583   :  { %v1701_v19 = vpop.permute.xlu0 %1700 }
0x2584   :  { %v1703_v21 = vmul.f32 %v2833_v52, %v1701_v19 }
0x2586   :  { %v1704_v22 = vadd.f32 %v2836_v54, %v1703_v21 }
0x2588   :  { %v1708_v23 = vsel %vm3054_vm11, %v1704_v22, %v2889_v28 }
0x25eb   :  { %v1715_v18 = vpop.permute.xlu1 %1714 }
0x25ec   :  { %2390 = vmatmul.mubr.msk.f32.vlgmr.msra.gmra.mxu1 %vm162_vm2, %v1715_v18 }
0x25ed   :  { %2404 = vmatpush3.msra.mxu1 %v65_v58 }
0x26ac   :  { %v1784_v25 = vpop.f32.mrf.mxu1 }
0x26ad   :  { %v1785_v26 = vadd.f32 %v1784_v25, %v1708_v23 }
0x26ae   :  { %v2391_v27 = vpop.f32.mrf.mxu1 }
0x26af   :  { %2553 = vtanh.f32 %v1785_v26  ;;  %v2126_v29 = vmul.f32 -1.442695, %v1785_v26 }
0x26b1   :  { %2555 = vpow2.f32 %v2126_v29 }
0x26bc   :  { %v2554_v12 = vpop.eup %2553 }
0x26bd   :  { %1797 = vrot.lane.b32.xlu1 %v2554_v12, %s2611_s3 }
0x26be   :  { %v2556_v30 = vpop.eup %2555 }
0x26bf   :  { %v1791_v31 = vadd.f32 1.0, %v2556_v30 }
0x26c1   :  { %2557 = vrcp.f32 %v1791_v31 }
0x26ce   :  { %v2558_v32 = vpop.eup %2557 }
0x26cf   :  { %v1795_v35 = vmul.f32 %v2558_v32, %v1690_v59  ;;  %v64_v59 = vld [vmem:[#allocation5 + $0x80] sm:$0xff] }
0x26d0   :  { %2405 = vmatprep.subr.mxu1 %v64_v59 }
0x26d1   :  { %2406 = vmatpush3.msra.mxu1 %v64_v59 }
0x26d2   :  { %2407 = vmatprep.subr.mxu1 %v63_v60 }
0x26d3   :  { %2408 = vmatpush3.msra.mxu1 %v63_v60 }
0x26d4   :  { %2409 = vmatprep.subr.mxu1 %v62_v61 }
0x26d5   :  { %2410 = vmatpush3.msra.mxu1 %v62_v61 }
0x272f   :  { %v1798_v33 = vpop.permute.xlu1 %1797 }
0x2730   :  { %v1800_v34 = vmul.f32 %v2558_v32, %v1798_v33 }
0x2732   :  { %1802 = vrot.lane.b32.xlu1 %v1800_v34, %s2612_s30 }
0x27a4   :  { %v1803_v36 = vpop.permute.xlu1 %1802 }
0x27a5   :  { %v1805_v37 = vadd.f32 %v1803_v36, %v1795_v35 }
0x27a7   :  { %2559 = vtanh.f32 %v1805_v37 }
0x27b4   :  { %v2560_v38 = vpop.eup %2559 }
0x27b5   :  { %1808 = vrot.lane.b32.xlu0 %v2560_v38, %s2611_s3 }
0x27b9   :  { %1815 = vperm.xlu0 %2440, %v2845_v11  }
0x2827   :  { %v1809_v15 = vpop.permute.xlu0 %1808 }
0x2828   :  { %v1811_v47 = vmul.f32 %v2558_v32, %v1809_v15 }
0x282a   :  { %v1935_v44 = vrot.slane %v1811_v47, 4  ;;  %1829 = vrot.lane.b32.xlu1 %v1811_v47, %s2612_s30 }
0x282c   :  { %v1947_v48 = vsel %vm1942_vm7, %v1946_v17, %v1935_v44 }
0x2834   :  { %v1816_v3 = vpop.permute.xlu0 %1815 }
0x2835   :  { %v1818_v20 = vmul.f32 %v2833_v52, %v1816_v3 }
0x2837   :  { %v1819_v49 = vadd.f32 %v2836_v54, %v1818_v20 }
0x2839   :  { %v1823_v11 = vsel %vm3088_vm12, %v1819_v49, %v2889_v28 }
0x289c   :  { %v1830_v45 = vpop.permute.xlu1 %1829 }
0x289d   :  { %2401 = vmatmul.mubr.msk.f32.vlgmr.msra.gmra.mxu0 %vm162_vm2, %v1830_v45 }
0x295d   :  { %v1899_v50 = vpop.f32.mrf.mxu0 }
0x295e   :  { %v1900_v51 = vadd.f32 %v1899_v50, %v1823_v11 }
0x295f   :  { %v2402_v2 = vpop.f32.mrf.mxu0 }
0x2960   :  { %2561 = vtanh.f32 %v1900_v51  ;;  %v2129_v41 = vmul.f32 -1.442695, %v1900_v51 }
0x2962   :  { %2563 = vpow2.f32 %v2129_v41 }
0x296d   :  { %v2562_v53 = vpop.eup %2561 }
0x296e   :  { %1912 = vrot.lane.b32.xlu1 %v2562_v53, %s2611_s3 }
0x296f   :  { %v2564_v5 = vpop.eup %2563 }
0x2970   :  { %v1906_v55 = vadd.f32 1.0, %v2564_v5 }
0x2972   :  { %2565 = vrcp.f32 %v1906_v55 }
0x297f   :  { %v2566_v6 = vpop.eup %2565 }
0x2980   :  { %v1910_v54 = vmul.f32 %v2566_v6, %v1805_v37 }
0x29e0   :  { %v1913_v52 = vpop.permute.xlu1 %1912 }
0x29e1   :  { %v1915_v56 = vmul.f32 %v2566_v6, %v1913_v52 }
0x29e3   :  { %1917 = vrot.lane.b32.xlu1 %v1915_v56, %s2612_s30 }
0x29e7   :  { %1955 = vrot.lane.b32.xlu1 %v3001_v0, %s2612_s30 }
0x2a55   :  { %v1918_v28 = vpop.permute.xlu1 %1917 }
0x2a56   :  { %v1920_v57 = vadd.f32 %v1918_v28, %v1910_v54 }
0x2a58   :  { %2567 = vtanh.f32 %v1920_v57 }
0x2a59   :  { %v1956_v7 = vpop.permute.xlu1 %1955 }
0x2a5a   :  { %2411 = vmatprep.mubr.msk.f32.mxu1 %vm162_vm2, %v1956_v7 }
0x2a65   :  { %v2568_v62 = vpop.eup %2567 }
0x2a66   :  { %1923 = vrot.lane.b32.xlu0 %v2568_v62, %s2611_s3 }
0x2ad8   :  { %v1924_v0 = vpop.permute.xlu0 %1923 }
0x2ad9   :  { %v1926_v63 = vmul.f32 %v2566_v6, %v1924_v0 }
0x2adb   :  { %v1938_v1 = vrot.slane %v1926_v63, 2 }
0x2add   :  { %v1948_v4 = vsel %vm1944_vm9, %v1947_v48, %v1938_v1 }
0x2ade   :  { %1957 = vrot.lane.b32.xlu0 %v1948_v4, %s2612_s30 }
0x2b50   :  { %v1958_v8 = vpop.permute.xlu0 %1957 }
0x2b51   :  { %2412 = vmatmul.mubr.msk.f32.vlgmr.msra.gmra.mxu1 %vm162_vm2, %v1958_v8 }
0x2c11   :  { %v2413_v14 = vpop.f32.mrf.mxu1 }
0x2c12   :  { %v2035_v16 = vadd.f32 %v2413_v14, %v2130_v9 }
0x2c13   :  { %v2029_v18 = vpop.f32.mrf.mxu1 }
0x2c14   :  { %v2030_v19 = vadd.f32 %v2130_v9, %v2029_v18  ;;  %2052 = vrot.lane.b32.xlu0 %v2035_v16, %s2612_s30  ;;  %v2055_v21 = vrot.slane %v2035_v16, 2  ;;  %v2059_v25 = vrot.slane %v2035_v16, 4  ;;  %v2063_v27 = vrot.slane %v2035_v16, 6 }
0x2c16   :  { %2056 = vrot.lane.b32.xlu1 %v2055_v21, %s2620_s21  ;;  %v2043_v22 = vrot.slane %v2030_v19, 4  ;;  %v2039_v23 = vrot.slane %v2030_v19, 2  ;;  %v2047_v26 = vrot.slane %v2030_v19, 6 }
0x2c18   :  { %2044 = vrot.lane.b32.xlu0 %v2043_v22, %s2621_s22 }
0x2c1a   :  { %2040 = vrot.lane.b32.xlu1 %v2039_v23, %s2608_s23 }
0x2c1c   :  { %2060 = vrot.lane.b32.xlu0 %v2059_v25, %s2622_s0 }
0x2c1e   :  { %2048 = vrot.lane.b32.xlu1 %v2047_v26, %s2623_s24 }
0x2c22   :  { %2064 = vrot.lane.b32.xlu1 %v2063_v27, %s2624_s25 }
0x2c86   :  { %v2053_v12 = vpop.permute.xlu0 %2052 }
0x2c88   :  { %v2057_v29 = vpop.permute.xlu1 %2056 }
0x2c8a   :  { %v2045_v31 = vpop.permute.xlu0 %2044 }
0x2c8c   :  { %v2041_v30 = vpop.permute.xlu1 %2040 }
0x2c8d   :  { %v2067_v32 = vsel %vm80_vm0, %v2030_v19, %v2041_v30 }
0x2c8e   :  { %v2069_v33 = vsel %vm2068_vm13, %v2067_v32, %v2045_v31  ;;  %v2061_v37 = vpop.permute.xlu0 %2060 }
0x2c90   :  { %v2049_v34 = vpop.permute.xlu1 %2048 }
0x2c91   :  { %v2071_v35 = vsel %vm2070_vm14, %v2069_v33, %v2049_v34 }
0x2c92   :  { %v2072_v36 = vsel %vm162_vm2, %v2071_v35, %v2053_v12 }
0x2c93   :  { %v2074_v38 = vsel %vm2073_vm15, %v2072_v36, %v2057_v29 }
0x2c94   :  { %v2076_v39 = vsel %vm2075_vm1, %v2074_v38, %v2061_v37  ;;  %v2065_v40 = vpop.permute.xlu1 %2064 }
0x2c95   :  { %v2078_v24 = vsel %vm2077_vm3, %v2076_v39, %v2065_v40 }
0x2c96   :  { %2080 = vst.msk [vmem:[%s3142_s4] sm:$0x3] %vm2079_vm4, %v2078_v24 }
0x2c97   :  { %2085 = vsyncpa [#allocation3], 1 }
0x2c98   :  { %2086 = vsyncpa [#allocation4], 1 }

</bundles_post_ra>
